<compile_context>
chip_gen: v7x
topology: tpu7x:2x2x1
jax: 0.10.0
libtpu: 0.0.40
codegen_flags: <defaults>
</compile_context>

<pallas_src>
import functools

import numpy as np
import jax
import jax.numpy as jnp
from jax import lax
from jax.experimental import pallas as pl
from jax.experimental.pallas import tpu as pltpu

EPS = 1e-5


# ----------------------------------------------------------------------------
# Wrapper-side weight lowering (pure layout algebra, done once per call).
# ----------------------------------------------------------------------------
def _lower_conv3x3(w_hwio, W, Wo, stride):
    """Lower a 3x3 / pad=1 / `stride` conv to per-row-shift lane matmul matrices.

    Returns (shifts, mats); mats[i] has shape (stride*W*Ci, Wo*Co) and acts on a
    paired-row slab whose lane index is (sub_row*W + wi)*Ci + ci, after shifting
    the slab by shifts[i] paired rows (shift realized in-kernel).
    """
    Kh, Kw, Ci, Co = w_hwio.shape
    shifts = sorted({(dy - 1) // stride for dy in range(Kh)})
    mats = []
    for k in shifts:
        t = np.zeros((Kh, Kw, stride * W, Wo), np.float32)
        for dy in range(Kh):
            if (dy - 1) // stride != k:
                continue
            sub = (dy - 1) - k * stride
            for dx in range(Kw):
                for wo in range(Wo):
                    wi = stride * wo + dx - 1
                    if 0 <= wi < W:
                        t[dy, dx, sub * W + wi, wo] = 1.0
        m = jnp.einsum("yxpq,yxio->piqo", jnp.asarray(t), w_hwio,
                       precision=lax.Precision.HIGHEST)
        mats.append(m.reshape(stride * W * Ci, Wo * Co))
    return shifts, mats


def _lower_conv1x1(w_io, W, Wo, stride):
    """Lower a 1x1 / `stride` conv into one (stride*W*Ci, Wo*Co) lane matmul."""
    Ci, Co = w_io.shape
    t = np.zeros((stride * W, Wo), np.float32)
    for wo in range(Wo):
        t[stride * wo, wo] = 1.0
    m = jnp.einsum("pq,io->piqo", jnp.asarray(t), w_io,
                   precision=lax.Precision.HIGHEST)
    return m.reshape(stride * W * Ci, Wo * Co)


def _row_shift_mats(N, Ho):
    """0/1 row selectors: [0] reads row-1, [1] reads row+1 (zeros at image borders)."""
    R = N * Ho
    mats = np.zeros((2, R, R), np.float32)
    for n in range(N):
        for ho in range(Ho):
            r = n * Ho + ho
            if ho > 0:
                mats[0, r, r - 1] = 1.0
            if ho < Ho - 1:
                mats[1, r, r + 1] = 1.0
    return mats


# ----------------------------------------------------------------------------
# Kernel
# ----------------------------------------------------------------------------
def resblock_kernel(shifts1, shifts2, inv_m, compute_dtype,
                    x_ref, shift_ref, w0_ref, w1_ref, w2_ref, p_ref,
                    g0_ref, be0_ref, g1_ref, be1_ref, g2_ref, be2_ref,
                    out_ref):
    cd = compute_dtype
    x = x_ref[...]                                    # (R, Lin), compute dtype

    def tap(slab, k):
        # Vertical tap = 0/1 row-selection matmul on the idle MXU; zero rows at
        # image borders give the H-direction padding for free (no roll/mask).
        if k == 0:
            return slab
        sel = shift_ref[0] if k < 0 else shift_ref[1]
        return jnp.dot(sel, slab, preferred_element_type=jnp.float32).astype(cd)

    def conv(slab, shifts, w_ref):
        acc = None
        for i, k in enumerate(shifts):
            part = jnp.dot(tap(slab, k), w_ref[i],
                           preferred_element_type=jnp.float32)
            acc = part if acc is None else acc + part
        return acc                                    # (R, Lout) f32

    def bn(acc, g_ref, be_ref):
        # Train-mode BN, biased variance, TWO-PASS f32 statistics.  The P matmul
        # sums each channel's Wo lanes and broadcasts the result back per lane,
        # so the whole BN stays lane-dense (no (1, C) lane-sparse values).
        mean = jnp.sum(jnp.dot(acc, p_ref[...],
                               preferred_element_type=jnp.float32),
                       axis=0, keepdims=True) * inv_m
        dev = acc - mean
        var = jnp.sum(jnp.dot(dev * dev, p_ref[...],
                              preferred_element_type=jnp.float32),
                      axis=0, keepdims=True) * inv_m
        scale = g_ref[...] * lax.rsqrt(var + EPS)
        return dev * scale + be_ref[...]

    # Shortcut branch: conv0 (1x1, stride) is a single lane-dense matmul on x.
    y0 = jnp.dot(x, w0_ref[...], preferred_element_type=jnp.float32)

    # Main branch: conv1 -> bn1 -> relu1 -> conv2 -> bn2 (all f32 elementwise).
    d1 = jnp.maximum(bn(conv(x, shifts1, w1_ref), g1_ref, be1_ref), 0.0)
    acc2 = conv(d1.astype(cd), shifts2, w2_ref)

    out = jnp.maximum(bn(acc2, g2_ref, be2_ref) + bn(y0, g0_ref, be0_ref), 0.0)
    out_ref[...] = out.astype(out_ref.dtype)          # lane-dense unmasked store


# ----------------------------------------------------------------------------
# Wrapper
# ----------------------------------------------------------------------------
def resblock_forward(x_nchw, params, stride, compute_dtype=jnp.float32):
    """Pallas ResBlock forward. x_nchw: (N, Cin, H, W) f32 -> (N, Cout, Ho, Wo)."""
    N, Cin, H, W = x_nchw.shape
    Cout = params["w0"].shape[-1]
    if H % stride or W % stride:
        raise ValueError("H and W must be divisible by stride")
    Ho, Wo = H // stride, W // stride
    R, Lin, Lout = N * Ho, stride * W * Cin, Wo * Cout
    cd = compute_dtype

    # NCHW -> NHWC boundary glue for the PyTorch interface.
    x_nhwc = jnp.transpose(x_nchw, (0, 2, 3, 1)).astype(jnp.float32)
    # Lane-dense paired-row slab: row (n, ho) holds input rows
    # [stride*ho, stride*ho + stride); lane index = (sub*W + wi)*Cin + ci.
    x_slab = x_nhwc.reshape(N, Ho, stride, W, Cin).reshape(R, Lin).astype(cd)

    # Lower convs to lane matmuls (conv biases dropped: train-mode BN cancels them).
    w0 = _lower_conv1x1(params["w0"], W, Wo, stride).astype(cd)
    shifts1, m1 = _lower_conv3x3(params["w1"], W, Wo, stride)
    shifts2, m2 = _lower_conv3x3(params["w2"], Wo, Wo, 1)
    w1 = jnp.stack(m1).astype(cd)
    w2 = jnp.stack(m2).astype(cd)

    shift_mats = jnp.asarray(_row_shift_mats(N, Ho)).astype(cd)            # (2, R, R)
    pmat = jnp.asarray(np.tile(np.eye(Cout, dtype=np.float32), (Wo, Wo)))  # (Lout, Lout)

    lane = lambda v: jnp.tile(v.reshape(1, Cout).astype(jnp.float32), (1, Wo))
    args = (x_slab, shift_mats, w0, w1, w2, pmat,
            lane(params["g0"]), lane(params["be0"]),
            lane(params["g1"]), lane(params["be1"]),
            lane(params["g2"]), lane(params["be2"]))

    flops = (2 * R * Lin * Lout * (1 + len(shifts1))     # conv0 + conv1
             + 2 * R * Lout * Lout * len(shifts2)        # conv2
             + 2 * R * R * (2 * Lin + 2 * Lout)          # row-shift selections
             + 6 * 2 * R * Lout * Lout)                  # BN channel-sum matmuls
    bytes_accessed = sum(int(a.size) * a.dtype.itemsize for a in args) + R * Lout * 4

    kernel = functools.partial(resblock_kernel, tuple(shifts1), tuple(shifts2),
                               1.0 / (R * Wo), cd)
    out_slab = pl.pallas_call(
        kernel,
        out_shape=jax.ShapeDtypeStruct((R, Lout), jnp.float32),
        in_specs=[pl.BlockSpec(memory_space=pltpu.MemorySpace.VMEM) for _ in args],
        out_specs=pl.BlockSpec(memory_space=pltpu.MemorySpace.VMEM),
        cost_estimate=pl.CostEstimate(flops=int(flops),
                                      transcendentals=3 * Lout,
                                      bytes_accessed=int(bytes_accessed)),
    )(*args)

    out_nhwc = out_slab.reshape(N, Ho, Wo, Cout)
    return jnp.transpose(out_nhwc, (0, 3, 1, 2))        # back to NCHW


# ----------------------------------------------------------------------------
# Parameters and plain-JAX reference (mirrors the PyTorch forward).
# ----------------------------------------------------------------------------
def init_params(key, in_channels, out_channels):
    ks = jax.random.split(key, 12)
    gb = lambda k: 1.0 + 0.1 * jax.random.normal(k, (1, out_channels), jnp.float32)
    bt = lambda k: 0.1 * jax.random.normal(k, (1, out_channels), jnp.float32)
    return dict(
        # conv0: 1x1 -> stored (Cin, Cout)
        w0=jax.random.normal(ks[0], (in_channels, out_channels), jnp.float32) * 0.1,
        b0=jax.random.normal(ks[3], (1, out_channels), jnp.float32) * 0.05,
        g0=gb(ks[6]), be0=bt(ks[7]),
        # conv1: 3x3 -> stored HWIO (3, 3, Cin, Cout)
        w1=jax.random.normal(ks[1], (3, 3, in_channels, out_channels), jnp.float32) * 0.1,
        b1=jax.random.normal(ks[4], (1, out_channels), jnp.float32) * 0.05,
        g1=gb(ks[8]), be1=bt(ks[9]),
        # conv2: 3x3 -> stored HWIO (3, 3, Cout, Cout)
        w2=jax.random.normal(ks[2], (3, 3, out_channels, out_channels), jnp.float32) * 0.1,
        b2=jax.random.normal(ks[5], (1, out_channels), jnp.float32) * 0.05,
        g2=gb(ks[10]), be2=bt(ks[11]),
    )


def resblock_reference(x_nchw, params, stride):
    """Plain-JAX reference of the PyTorch forward (train-mode BN, with biases)."""
    x = jnp.transpose(x_nchw, (0, 2, 3, 1))

    def conv(a, w, b, s, p):
        return lax.conv_general_dilated(
            a, w, (s, s), ((p, p), (p, p)),
            dimension_numbers=("NHWC", "HWIO", "NHWC"),
            precision=lax.Precision.HIGHEST) + b

    def bn(a, g, be):
        m = a.mean(axis=(0, 1, 2))
        v = ((a - m) ** 2).mean(axis=(0, 1, 2))
        return (a - m) * lax.rsqrt(v + EPS) * g + be

    w0 = params["w0"].reshape(1, 1, *params["w0"].shape)
    shortcut = bn(conv(x, w0, params["b0"], stride, 0), params["g0"], params["be0"])
    d = jnp.maximum(
        bn(conv(x, params["w1"], params["b1"], stride, 1), params["g1"], params["be1"]),
        0.0)
    d = bn(conv(d, params["w2"], params["b2"], 1, 1), params["g2"], params["be2"])
    return jnp.transpose(jnp.maximum(d + shortcut, 0.0), (0, 3, 1, 2))


if __name__ == "__main__":
    N, Cin, H, W = 2, 4, 16, 16
    Cout = 8

    key = jax.random.PRNGKey(0)
    kx, kp = jax.random.split(key)
    x = jax.random.normal(kx, (N, Cin, H, W), jnp.float32)
    params = init_params(kp, Cin, Cout)

    # f32 MXU path, stride 1 and stride 2 (exercises the paired-row layout).
    for stride in (1, 2):
        ref = resblock_reference(x, params, stride)
        out = jax.block_until_ready(resblock_forward(x, params, stride))
        assert out.shape == (N, Cout, H // stride, W // stride), out.shape
        err = float(jnp.max(jnp.abs(out - ref)))
        assert err < 1e-3, f"stride={stride} max abs err {err}"

    # bf16 MXU operands (f32 accumulation + f32 BN/elementwise): loose check.
    ref1 = resblock_reference(x, params, 1)
    out_bf16 = jax.block_until_ready(
        resblock_forward(x, params, 1, compute_dtype=jnp.bfloat16))
    err_bf16 = float(jnp.max(jnp.abs(out_bf16 - ref1)))
    assert err_bf16 < 0.1, f"bf16 max abs err {err_bf16}"

    print("KERNEL_OK")
</pallas_src>

<mosaic_0001>
module attributes {stable_mosaic.version = 11 : i64} {
  func.func @resblock_kernel(%arg0: memref<32x64xf32, #tpu.memory_space<vmem>>, %arg1: memref<2x32x32xf32, #tpu.memory_space<vmem>>, %arg2: memref<64x128xf32, #tpu.memory_space<vmem>>, %arg3: memref<3x64x128xf32, #tpu.memory_space<vmem>>, %arg4: memref<3x128x128xf32, #tpu.memory_space<vmem>>, %arg5: memref<128x128xf32, #tpu.memory_space<vmem>>, %arg6: memref<1x128xf32, #tpu.memory_space<vmem>>, %arg7: memref<1x128xf32, #tpu.memory_space<vmem>>, %arg8: memref<1x128xf32, #tpu.memory_space<vmem>>, %arg9: memref<1x128xf32, #tpu.memory_space<vmem>>, %arg10: memref<1x128xf32, #tpu.memory_space<vmem>>, %arg11: memref<1x128xf32, #tpu.memory_space<vmem>>, %arg12: memref<32x128xf32, #tpu.memory_space<vmem>>) attributes {dimension_semantics = [], scalar_prefetch = 0 : i64, scratch_operands = 0 : i64, tpu.core_type = #tpu.core_type<tc>} {
    %c0 = arith.constant 0 : index
    %c0_0 = arith.constant 0 : index
    %0 = vector.load %arg0[%c0, %c0_0] : memref<32x64xf32, #tpu.memory_space<vmem>>, vector<32x64xf32>
    %c0_1 = arith.constant 0 : index
    %c0_2 = arith.constant 0 : index
    %1 = vector.load %arg2[%c0_1, %c0_2] : memref<64x128xf32, #tpu.memory_space<vmem>>, vector<64x128xf32>
    %cst = arith.constant dense<0.000000e+00> : vector<32x128xf32>
    %2 = tpu.matmul %0, %1, %cst {dimension_numbers = #tpu.dot_dimension_numbers<[1], [0], [0], [1], [0, 0, 1, 1], [], []>} : vector<32x64xf32>, vector<64x128xf32>, vector<32x128xf32> -> vector<32x128xf32>
    %c0_3 = arith.constant 0 : index
    %c0_4 = arith.constant 0 : index
    %c0_5 = arith.constant 0 : index
    %3 = vector.load %arg1[%c0_3, %c0_4, %c0_5] : memref<2x32x32xf32, #tpu.memory_space<vmem>>, vector<1x32x32xf32>
    %4 = vector.shape_cast %3 : vector<1x32x32xf32> to vector<32x32xf32>
    %cst_6 = arith.constant dense<0.000000e+00> : vector<32x64xf32>
    %5 = tpu.matmul %4, %0, %cst_6 {dimension_numbers = #tpu.dot_dimension_numbers<[1], [0], [0], [1], [0, 0, 1, 1], [], []>} : vector<32x32xf32>, vector<32x64xf32>, vector<32x64xf32> -> vector<32x64xf32>
    %c0_7 = arith.constant 0 : index
    %c0_8 = arith.constant 0 : index
    %c0_9 = arith.constant 0 : index
    %6 = vector.load %arg3[%c0_7, %c0_8, %c0_9] : memref<3x64x128xf32, #tpu.memory_space<vmem>>, vector<1x64x128xf32>
    %7 = vector.shape_cast %6 : vector<1x64x128xf32> to vector<64x128xf32>
    %cst_10 = arith.constant dense<0.000000e+00> : vector<32x128xf32>
    %8 = tpu.matmul %5, %7, %cst_10 {dimension_numbers = #tpu.dot_dimension_numbers<[1], [0], [0], [1], [0, 0, 1, 1], [], []>} : vector<32x64xf32>, vector<64x128xf32>, vector<32x128xf32> -> vector<32x128xf32>
    %c1 = arith.constant 1 : index
    %c0_11 = arith.constant 0 : index
    %c0_12 = arith.constant 0 : index
    %9 = vector.load %arg3[%c1, %c0_11, %c0_12] : memref<3x64x128xf32, #tpu.memory_space<vmem>>, vector<1x64x128xf32>
    %10 = vector.shape_cast %9 : vector<1x64x128xf32> to vector<64x128xf32>
    %cst_13 = arith.constant dense<0.000000e+00> : vector<32x128xf32>
    %11 = tpu.matmul %0, %10, %cst_13 {dimension_numbers = #tpu.dot_dimension_numbers<[1], [0], [0], [1], [0, 0, 1, 1], [], []>} : vector<32x64xf32>, vector<64x128xf32>, vector<32x128xf32> -> vector<32x128xf32>
    %12 = arith.addf %8, %11 : vector<32x128xf32>
    %c1_14 = arith.constant 1 : index
    %c0_15 = arith.constant 0 : index
    %c0_16 = arith.constant 0 : index
    %13 = vector.load %arg1[%c1_14, %c0_15, %c0_16] : memref<2x32x32xf32, #tpu.memory_space<vmem>>, vector<1x32x32xf32>
    %14 = vector.shape_cast %13 : vector<1x32x32xf32> to vector<32x32xf32>
    %cst_17 = arith.constant dense<0.000000e+00> : vector<32x64xf32>
    %15 = tpu.matmul %14, %0, %cst_17 {dimension_numbers = #tpu.dot_dimension_numbers<[1], [0], [0], [1], [0, 0, 1, 1], [], []>} : vector<32x32xf32>, vector<32x64xf32>, vector<32x64xf32> -> vector<32x64xf32>
    %c2 = arith.constant 2 : index
    %c0_18 = arith.constant 0 : index
    %c0_19 = arith.constant 0 : index
    %16 = vector.load %arg3[%c2, %c0_18, %c0_19] : memref<3x64x128xf32, #tpu.memory_space<vmem>>, vector<1x64x128xf32>
    %17 = vector.shape_cast %16 : vector<1x64x128xf32> to vector<64x128xf32>
    %cst_20 = arith.constant dense<0.000000e+00> : vector<32x128xf32>
    %18 = tpu.matmul %15, %17, %cst_20 {dimension_numbers = #tpu.dot_dimension_numbers<[1], [0], [0], [1], [0, 0, 1, 1], [], []>} : vector<32x64xf32>, vector<64x128xf32>, vector<32x128xf32> -> vector<32x128xf32>
    %19 = arith.addf %12, %18 : vector<32x128xf32>
    %c0_21 = arith.constant 0 : index
    %c0_22 = arith.constant 0 : index
    %20 = vector.load %arg5[%c0_21, %c0_22] : memref<128x128xf32, #tpu.memory_space<vmem>>, vector<128x128xf32>
    %cst_23 = arith.constant dense<0.000000e+00> : vector<32x128xf32>
    %21 = tpu.matmul %19, %20, %cst_23 {dimension_numbers = #tpu.dot_dimension_numbers<[1], [0], [0], [1], [0, 0, 1, 1], [], []>} : vector<32x128xf32>, vector<128x128xf32>, vector<32x128xf32> -> vector<32x128xf32>
    %cst_24 = arith.constant dense<0.000000e+00> : vector<128xf32>
    %22 = vector.multi_reduction <add>, %21, %cst_24 [0] : vector<32x128xf32> to vector<128xf32>
    %23 = vector.shape_cast %22 : vector<128xf32> to vector<1x128xf32>
    %cst_25 = arith.constant 0.001953125 : f32
    %24 = vector.broadcast %cst_25 : f32 to vector<1x128xf32>
    %25 = arith.mulf %23, %24 : vector<1x128xf32>
    %26 = vector.broadcast %25 : vector<1x128xf32> to vector<32x128xf32>
    %27 = arith.subf %19, %26 : vector<32x128xf32>
    %28 = arith.mulf %27, %27 : vector<32x128xf32>
    %c0_26 = arith.constant 0 : index
    %c0_27 = arith.constant 0 : index
    %29 = vector.load %arg5[%c0_26, %c0_27] : memref<128x128xf32, #tpu.memory_space<vmem>>, vector<128x128xf32>
    %cst_28 = arith.constant dense<0.000000e+00> : vector<32x128xf32>
    %30 = tpu.matmul %28, %29, %cst_28 {dimension_numbers = #tpu.dot_dimension_numbers<[1], [0], [0], [1], [0, 0, 1, 1], [], []>} : vector<32x128xf32>, vector<128x128xf32>, vector<32x128xf32> -> vector<32x128xf32>
    %cst_29 = arith.constant dense<0.000000e+00> : vector<128xf32>
    %31 = vector.multi_reduction <add>, %30, %cst_29 [0] : vector<32x128xf32> to vector<128xf32>
    %32 = vector.shape_cast %31 : vector<128xf32> to vector<1x128xf32>
    %cst_30 = arith.constant 0.001953125 : f32
    %33 = vector.broadcast %cst_30 : f32 to vector<1x128xf32>
    %34 = arith.mulf %32, %33 : vector<1x128xf32>
    %c0_31 = arith.constant 0 : index
    %c0_32 = arith.constant 0 : index
    %35 = vector.load %arg8[%c0_31, %c0_32] : memref<1x128xf32, #tpu.memory_space<vmem>>, vector<1x128xf32>
    %cst_33 = arith.constant 9.99999974E-6 : f32
    %36 = vector.broadcast %cst_33 : f32 to vector<1x128xf32>
    %37 = arith.addf %34, %36 : vector<1x128xf32>
    %38 = math.rsqrt %37 : vector<1x128xf32>
    %39 = arith.mulf %35, %38 : vector<1x128xf32>
    %40 = vector.broadcast %39 : vector<1x128xf32> to vector<32x128xf32>
    %41 = arith.mulf %27, %40 : vector<32x128xf32>
    %c0_34 = arith.constant 0 : index
    %c0_35 = arith.constant 0 : index
    %42 = vector.load %arg9[%c0_34, %c0_35] : memref<1x128xf32, #tpu.memory_space<vmem>>, vector<1x128xf32>
    %43 = vector.broadcast %42 : vector<1x128xf32> to vector<32x128xf32>
    %44 = arith.addf %41, %43 : vector<32x128xf32>
    %cst_36 = arith.constant 0.000000e+00 : f32
    %45 = vector.broadcast %cst_36 : f32 to vector<32x128xf32>
    %46 = arith.maximumf %44, %45 : vector<32x128xf32>
    %c0_37 = arith.constant 0 : index
    %c0_38 = arith.constant 0 : index
    %c0_39 = arith.constant 0 : index
    %47 = vector.load %arg1[%c0_37, %c0_38, %c0_39] : memref<2x32x32xf32, #tpu.memory_space<vmem>>, vector<1x32x32xf32>
    %48 = vector.shape_cast %47 : vector<1x32x32xf32> to vector<32x32xf32>
    %cst_40 = arith.constant dense<0.000000e+00> : vector<32x128xf32>
    %49 = tpu.matmul %48, %46, %cst_40 {dimension_numbers = #tpu.dot_dimension_numbers<[1], [0], [0], [1], [0, 0, 1, 1], [], []>} : vector<32x32xf32>, vector<32x128xf32>, vector<32x128xf32> -> vector<32x128xf32>
    %c0_41 = arith.constant 0 : index
    %c0_42 = arith.constant 0 : index
    %c0_43 = arith.constant 0 : index
    %50 = vector.load %arg4[%c0_41, %c0_42, %c0_43] : memref<3x128x128xf32, #tpu.memory_space<vmem>>, vector<1x128x128xf32>
    %51 = vector.shape_cast %50 : vector<1x128x128xf32> to vector<128x128xf32>
    %cst_44 = arith.constant dense<0.000000e+00> : vector<32x128xf32>
    %52 = tpu.matmul %49, %51, %cst_44 {dimension_numbers = #tpu.dot_dimension_numbers<[1], [0], [0], [1], [0, 0, 1, 1], [], []>} : vector<32x128xf32>, vector<128x128xf32>, vector<32x128xf32> -> vector<32x128xf32>
    %c1_45 = arith.constant 1 : index
    %c0_46 = arith.constant 0 : index
    %c0_47 = arith.constant 0 : index
    %53 = vector.load %arg4[%c1_45, %c0_46, %c0_47] : memref<3x128x128xf32, #tpu.memory_space<vmem>>, vector<1x128x128xf32>
    %54 = vector.shape_cast %53 : vector<1x128x128xf32> to vector<128x128xf32>
    %cst_48 = arith.constant dense<0.000000e+00> : vector<32x128xf32>
    %55 = tpu.matmul %46, %54, %cst_48 {dimension_numbers = #tpu.dot_dimension_numbers<[1], [0], [0], [1], [0, 0, 1, 1], [], []>} : vector<32x128xf32>, vector<128x128xf32>, vector<32x128xf32> -> vector<32x128xf32>
    %56 = arith.addf %52, %55 : vector<32x128xf32>
    %c1_49 = arith.constant 1 : index
    %c0_50 = arith.constant 0 : index
    %c0_51 = arith.constant 0 : index
    %57 = vector.load %arg1[%c1_49, %c0_50, %c0_51] : memref<2x32x32xf32, #tpu.memory_space<vmem>>, vector<1x32x32xf32>
    %58 = vector.shape_cast %57 : vector<1x32x32xf32> to vector<32x32xf32>
    %cst_52 = arith.constant dense<0.000000e+00> : vector<32x128xf32>
    %59 = tpu.matmul %58, %46, %cst_52 {dimension_numbers = #tpu.dot_dimension_numbers<[1], [0], [0], [1], [0, 0, 1, 1], [], []>} : vector<32x32xf32>, vector<32x128xf32>, vector<32x128xf32> -> vector<32x128xf32>
    %c2_53 = arith.constant 2 : index
    %c0_54 = arith.constant 0 : index
    %c0_55 = arith.constant 0 : index
    %60 = vector.load %arg4[%c2_53, %c0_54, %c0_55] : memref<3x128x128xf32, #tpu.memory_space<vmem>>, vector<1x128x128xf32>
    %61 = vector.shape_cast %60 : vector<1x128x128xf32> to vector<128x128xf32>
    %cst_56 = arith.constant dense<0.000000e+00> : vector<32x128xf32>
    %62 = tpu.matmul %59, %61, %cst_56 {dimension_numbers = #tpu.dot_dimension_numbers<[1], [0], [0], [1], [0, 0, 1, 1], [], []>} : vector<32x128xf32>, vector<128x128xf32>, vector<32x128xf32> -> vector<32x128xf32>
    %63 = arith.addf %56, %62 : vector<32x128xf32>
    %c0_57 = arith.constant 0 : index
    %c0_58 = arith.constant 0 : index
    %64 = vector.load %arg5[%c0_57, %c0_58] : memref<128x128xf32, #tpu.memory_space<vmem>>, vector<128x128xf32>
    %cst_59 = arith.constant dense<0.000000e+00> : vector<32x128xf32>
    %65 = tpu.matmul %63, %64, %cst_59 {dimension_numbers = #tpu.dot_dimension_numbers<[1], [0], [0], [1], [0, 0, 1, 1], [], []>} : vector<32x128xf32>, vector<128x128xf32>, vector<32x128xf32> -> vector<32x128xf32>
    %cst_60 = arith.constant dense<0.000000e+00> : vector<128xf32>
    %66 = vector.multi_reduction <add>, %65, %cst_60 [0] : vector<32x128xf32> to vector<128xf32>
    %67 = vector.shape_cast %66 : vector<128xf32> to vector<1x128xf32>
    %cst_61 = arith.constant 0.001953125 : f32
    %68 = vector.broadcast %cst_61 : f32 to vector<1x128xf32>
    %69 = arith.mulf %67, %68 : vector<1x128xf32>
    %70 = vector.broadcast %69 : vector<1x128xf32> to vector<32x128xf32>
    %71 = arith.subf %63, %70 : vector<32x128xf32>
    %72 = arith.mulf %71, %71 : vector<32x128xf32>
    %c0_62 = arith.constant 0 : index
    %c0_63 = arith.constant 0 : index
    %73 = vector.load %arg5[%c0_62, %c0_63] : memref<128x128xf32, #tpu.memory_space<vmem>>, vector<128x128xf32>
    %cst_64 = arith.constant dense<0.000000e+00> : vector<32x128xf32>
    %74 = tpu.matmul %72, %73, %cst_64 {dimension_numbers = #tpu.dot_dimension_numbers<[1], [0], [0], [1], [0, 0, 1, 1], [], []>} : vector<32x128xf32>, vector<128x128xf32>, vector<32x128xf32> -> vector<32x128xf32>
    %cst_65 = arith.constant dense<0.000000e+00> : vector<128xf32>
    %75 = vector.multi_reduction <add>, %74, %cst_65 [0] : vector<32x128xf32> to vector<128xf32>
    %76 = vector.shape_cast %75 : vector<128xf32> to vector<1x128xf32>
    %cst_66 = arith.constant 0.001953125 : f32
    %77 = vector.broadcast %cst_66 : f32 to vector<1x128xf32>
    %78 = arith.mulf %76, %77 : vector<1x128xf32>
    %c0_67 = arith.constant 0 : index
    %c0_68 = arith.constant 0 : index
    %79 = vector.load %arg10[%c0_67, %c0_68] : memref<1x128xf32, #tpu.memory_space<vmem>>, vector<1x128xf32>
    %cst_69 = arith.constant 9.99999974E-6 : f32
    %80 = vector.broadcast %cst_69 : f32 to vector<1x128xf32>
    %81 = arith.addf %78, %80 : vector<1x128xf32>
    %82 = math.rsqrt %81 : vector<1x128xf32>
    %83 = arith.mulf %79, %82 : vector<1x128xf32>
    %84 = vector.broadcast %83 : vector<1x128xf32> to vector<32x128xf32>
    %85 = arith.mulf %71, %84 : vector<32x128xf32>
    %c0_70 = arith.constant 0 : index
    %c0_71 = arith.constant 0 : index
    %86 = vector.load %arg11[%c0_70, %c0_71] : memref<1x128xf32, #tpu.memory_space<vmem>>, vector<1x128xf32>
    %87 = vector.broadcast %86 : vector<1x128xf32> to vector<32x128xf32>
    %88 = arith.addf %85, %87 : vector<32x128xf32>
    %c0_72 = arith.constant 0 : index
    %c0_73 = arith.constant 0 : index
    %89 = vector.load %arg5[%c0_72, %c0_73] : memref<128x128xf32, #tpu.memory_space<vmem>>, vector<128x128xf32>
    %cst_74 = arith.constant dense<0.000000e+00> : vector<32x128xf32>
    %90 = tpu.matmul %2, %89, %cst_74 {dimension_numbers = #tpu.dot_dimension_numbers<[1], [0], [0], [1], [0, 0, 1, 1], [], []>} : vector<32x128xf32>, vector<128x128xf32>, vector<32x128xf32> -> vector<32x128xf32>
    %cst_75 = arith.constant dense<0.000000e+00> : vector<128xf32>
    %91 = vector.multi_reduction <add>, %90, %cst_75 [0] : vector<32x128xf32> to vector<128xf32>
    %92 = vector.shape_cast %91 : vector<128xf32> to vector<1x128xf32>
    %cst_76 = arith.constant 0.001953125 : f32
    %93 = vector.broadcast %cst_76 : f32 to vector<1x128xf32>
    %94 = arith.mulf %92, %93 : vector<1x128xf32>
    %95 = vector.broadcast %94 : vector<1x128xf32> to vector<32x128xf32>
    %96 = arith.subf %2, %95 : vector<32x128xf32>
    %97 = arith.mulf %96, %96 : vector<32x128xf32>
    %c0_77 = arith.constant 0 : index
    %c0_78 = arith.constant 0 : index
    %98 = vector.load %arg5[%c0_77, %c0_78] : memref<128x128xf32, #tpu.memory_space<vmem>>, vector<128x128xf32>
    %cst_79 = arith.constant dense<0.000000e+00> : vector<32x128xf32>
    %99 = tpu.matmul %97, %98, %cst_79 {dimension_numbers = #tpu.dot_dimension_numbers<[1], [0], [0], [1], [0, 0, 1, 1], [], []>} : vector<32x128xf32>, vector<128x128xf32>, vector<32x128xf32> -> vector<32x128xf32>
    %cst_80 = arith.constant dense<0.000000e+00> : vector<128xf32>
    %100 = vector.multi_reduction <add>, %99, %cst_80 [0] : vector<32x128xf32> to vector<128xf32>
    %101 = vector.shape_cast %100 : vector<128xf32> to vector<1x128xf32>
    %cst_81 = arith.constant 0.001953125 : f32
    %102 = vector.broadcast %cst_81 : f32 to vector<1x128xf32>
    %103 = arith.mulf %101, %102 : vector<1x128xf32>
    %c0_82 = arith.constant 0 : index
    %c0_83 = arith.constant 0 : index
    %104 = vector.load %arg6[%c0_82, %c0_83] : memref<1x128xf32, #tpu.memory_space<vmem>>, vector<1x128xf32>
    %cst_84 = arith.constant 9.99999974E-6 : f32
    %105 = vector.broadcast %cst_84 : f32 to vector<1x128xf32>
    %106 = arith.addf %103, %105 : vector<1x128xf32>
    %107 = math.rsqrt %106 : vector<1x128xf32>
    %108 = arith.mulf %104, %107 : vector<1x128xf32>
    %109 = vector.broadcast %108 : vector<1x128xf32> to vector<32x128xf32>
    %110 = arith.mulf %96, %109 : vector<32x128xf32>
    %c0_85 = arith.constant 0 : index
    %c0_86 = arith.constant 0 : index
    %111 = vector.load %arg7[%c0_85, %c0_86] : memref<1x128xf32, #tpu.memory_space<vmem>>, vector<1x128xf32>
    %112 = vector.broadcast %111 : vector<1x128xf32> to vector<32x128xf32>
    %113 = arith.addf %110, %112 : vector<32x128xf32>
    %114 = arith.addf %88, %113 : vector<32x128xf32>
    %cst_87 = arith.constant 0.000000e+00 : f32
    %115 = vector.broadcast %cst_87 : f32 to vector<32x128xf32>
    %116 = arith.maximumf %114, %115 : vector<32x128xf32>
    %c0_88 = arith.constant 0 : index
    %c0_89 = arith.constant 0 : index
    %117 = vector.load %arg12[%c0_88, %c0_89] : memref<32x128xf32, #tpu.memory_space<vmem>>, vector<32x128xf32>
    tpu.vector_store %arg12[%c0_88, %c0_89], %116 {strides = array<i32>} : memref<32x128xf32, #tpu.memory_space<vmem>>, vector<32x128xf32>,
    return
  }
}

</mosaic_0001>

<bundles_post_ra>
// kernel: tpu_custom_call.1
= control target key start
LH: loop header
LB: loop body
LE: loop exit
PB: predicated region body
PF: predicated region fallthrough
CT: control target
= control target key end

     0   :  { %17 = vsyncpa [#allocation3], 0  ;;  %s3778_s0 = inlined_call_operand.hbm [shape: f32[32,64], index: 0, kind: input, shape index: {}]   ;;  %s3779_s1 = inlined_call_operand.hbm [shape: f32[2,32,32], index: 1, kind: input, shape index: {}]   ;;  %s3780_s2 = inlined_call_operand.hbm [shape: f32[64,128], index: 2, kind: input, shape index: {}]   ;;  %s3781_s3 = inlined_call_operand.hbm [shape: f32[3,64,128], index: 3, kind: input, shape index: {}]   ;;  %s3782_s4 = inlined_call_operand.hbm [shape: f32[3,128,128], index: 4, kind: input, shape index: {}]   ;;  %s3783_s5 = inlined_call_operand.hbm [shape: f32[128,128], index: 5, kind: input, shape index: {}]   ;;  %s3784_s6 = inlined_call_operand.vmem [shape: f32[1,128], index: 6, kind: input, shape index: {}]   ;;  %s3785_s7 = inlined_call_operand.vmem [shape: f32[1,128], index: 7, kind: input, shape index: {}]   ;;  %s3786_s8 = inlined_call_operand.vmem [shape: f32[1,128], index: 8, kind: input, shape index: {}]   ;;  %s3787_s9 = inlined_call_operand.vmem [shape: f32[1,128], index: 9, kind: input, shape index: {}]   ;;  %s3788_s10 = inlined_call_operand.vmem [shape: f32[1,128], index: 10, kind: input, shape index: {}]   ;;  %s3789_s11 = inlined_call_operand.vmem [shape: f32[1,128], index: 11, kind: input, shape index: {}]   ;;  %s3790_s12 = inlined_call_operand.hbm [shape: f32[32,128], index: 12, kind: output, shape index: {}]  }
   0x1   :  { %18 = vsyncpa [#allocation6], 0 }
   0x2   :  { %19 = vsyncpa [#allocation9], 0 }
   0x3   :  { %20 = vsyncpa [#allocation12], 0 }
   0x4   :  { %21 = vsyncpa [#allocation4], 0  ;;  %s3307_s21 = smov [#allocation5]   ;;  %s3308_s23 = smov [#allocation8]  }
   0x5   :  { %s39_s22 = sshll.u32 %s3307_s21, 4  ;;  %s63_s24 = sshll.u32 %s3308_s23, 4  ;;  %s40_s22 = int_to_ptr.vmem [resolvable:$true] %s39_s22  ;;  %s3381_s24 = int_to_ptr.vmem [resolvable:$true] %s63_s24 }
   0x6   :  { %s3143_s27 = scalar_lea.hbm %s3779_s1, 1024 }
   0x7   :  { %p3144_p0 = scmp.ne.s32.totalorder %s3779_s1, %s3143_s27  ;;  %p3147_p1 = scmp.lt.u32.totalorder %s3143_s27, %s3779_s1 }
   0x9   :  { %p3149_p2 = pnand %p3147_p1, %p3144_p0 }
   0xb   :  { %3152 = shalt.err (!%p3149_p2)
}
   0xc   :  { %s3153_s14 = scalar_lea.vmem %s40_s22, 1024  ;;  %p3158_p4 = scmp.lt.s32.totalorder %s40_s22, %s40_s22 }
   0xd   :  { %p3154_p3 = scmp.ne.s32.totalorder %s40_s22, %s3153_s14  ;;  %p3159_p5 = scmp.lt.s32.totalorder %s3153_s14, %s3153_s14 }
   0xf   :  { %p3160_p6 = por %p3159_p5, %p3158_p4 }
  0x11   :  { %p3161_p7 = pnand %p3160_p6, %p3154_p3 }
  0x13   :  { %3164 = shalt.err (!%p3161_p7)
}
  0x14   :  { %s3309_s15 = smov 128   ;;  %s3310_s16 = smov 8  }
  0x15   :  { %45 = dma.hbm_to_vmem [thread:$0]  %s3779_s1, 1024, %s40_s22, [#allocation6], %s3309_s15, %s3309_s15, %s3310_s16  }
  0x16   :  { %s3165_s21 = scalar_lea.hbm %s3781_s3, 3072 }
  0x17   :  { %p3166_p8 = scmp.ne.s32.totalorder %s3781_s3, %s3165_s21  ;;  %p3169_p9 = scmp.lt.u32.totalorder %s3165_s21, %s3781_s3 }
  0x19   :  { %p3171_p10 = pnand %p3169_p9, %p3166_p8 }
  0x1b   :  { %3174 = shalt.err (!%p3171_p10)
}
  0x1c   :  { %s3175_s28 = scalar_lea.vmem %s3381_s24, 3072  ;;  %p3180_p12 = scmp.lt.s32.totalorder %s3381_s24, %s3381_s24 }
  0x1d   :  { %p3176_p11 = scmp.ne.s32.totalorder %s3381_s24, %s3175_s28  ;;  %p3181_p13 = scmp.lt.s32.totalorder %s3175_s28, %s3175_s28 }
  0x1f   :  { %p3182_p0 = por %p3181_p13, %p3180_p12 }
  0x21   :  { %p3183_p1 = pnand %p3182_p0, %p3176_p11 }
  0x23   :  { %3186 = shalt.err (!%p3183_p1)
}
  0x24   :  { %69 = dma.hbm_to_vmem [thread:$0]  %s3781_s3, 3072, %s3381_s24, [#allocation9], %s3309_s15, %s3309_s15, %s3310_s16  }
  0x25   :  { %s3311_s29 = smov [#allocation2]   ;;  %s3312_s13 = smov [#allocation7]  }
  0x26   :  { %s27_s30 = sshll.u32 %s3311_s29, 4  ;;  %s51_s14 = sshll.u32 %s3312_s13, 4  ;;  %s28_s30 = int_to_ptr.vmem [resolvable:$true] %s27_s30  ;;  %s3418_s14 = int_to_ptr.vmem [resolvable:$true] %s51_s14 }
  0x27   :  { %s3187_s19 = scalar_lea.hbm %s3778_s0, 512 }
  0x28   :  { %p3188_p2 = scmp.ne.s32.totalorder %s3778_s0, %s3187_s19  ;;  %p3191_p3 = scmp.lt.u32.totalorder %s3187_s19, %s3778_s0 }
  0x2a   :  { %p3193_p4 = pnand %p3191_p3, %p3188_p2 }
  0x2c   :  { %3196 = shalt.err (!%p3193_p4)
}
  0x2d   :  { %s3197_s3 = scalar_lea.vmem %s28_s30, 512  ;;  %p3202_p6 = scmp.lt.s32.totalorder %s28_s30, %s28_s30 }
  0x2e   :  { %p3198_p5 = scmp.ne.s32.totalorder %s28_s30, %s3197_s3  ;;  %p3203_p7 = scmp.lt.s32.totalorder %s3197_s3, %s3197_s3 }
  0x30   :  { %p3204_p8 = por %p3203_p7, %p3202_p6 }
  0x32   :  { %p3205_p9 = pnand %p3204_p8, %p3198_p5 }
  0x34   :  { %3208 = shalt.err (!%p3205_p9)
}
  0x35   :  { %33 = dma.hbm_to_vmem [thread:$0]  %s3778_s0, 512, %s28_s30, [#allocation3], %s3309_s15, %s3309_s15, %s3310_s16  }
  0x36   :  { %s3209_s1 = scalar_lea.hbm %s3780_s2, 1024 }
  0x37   :  { %p3210_p10 = scmp.ne.s32.totalorder %s3780_s2, %s3209_s1  ;;  %p3213_p11 = scmp.lt.u32.totalorder %s3209_s1, %s3780_s2 }
  0x39   :  { %p3215_p12 = pnand %p3213_p11, %p3210_p10 }
  0x3b   :  { %3218 = shalt.err (!%p3215_p12)
}
  0x3c   :  { %s3219_s18 = scalar_lea.vmem %s3418_s14, 1024  ;;  %p3224_p0 = scmp.lt.s32.totalorder %s3418_s14, %s3418_s14 }
  0x3d   :  { %p3220_p13 = scmp.ne.s32.totalorder %s3418_s14, %s3219_s18  ;;  %p3225_p1 = scmp.lt.s32.totalorder %s3219_s18, %s3219_s18 }
  0x3f   :  { %p3226_p2 = por %p3225_p1, %p3224_p0 }
  0x41   :  { %p3227_p3 = pnand %p3226_p2, %p3220_p13 }
  0x43   :  { %3230 = shalt.err (!%p3227_p3)
}
  0x44   :  { %57 = dma.hbm_to_vmem [thread:$0]  %s3780_s2, 1024, %s3418_s14, [#allocation6], %s3309_s15, %s3309_s15, %s3310_s16  }
  0x45   :  { %s3313_s19 = smov [#allocation10]   ;;  %s3314_s21 = smov [#allocation11]  }
  0x46   :  { %s75_s20 = sshll.u32 %s3313_s19, 4  ;;  %s87_s23 = sshll.u32 %s3314_s21, 4  ;;  %s76_s20 = int_to_ptr.vmem [resolvable:$true] %s75_s20  ;;  %s3455_s23 = int_to_ptr.vmem [resolvable:$true] %s87_s23 }
  0x47   :  { %s3231_s24 = scalar_lea.hbm %s3782_s4, 6144 }
  0x48   :  { %p3232_p4 = scmp.ne.s32.totalorder %s3782_s4, %s3231_s24  ;;  %p3235_p5 = scmp.lt.u32.totalorder %s3231_s24, %s3782_s4 }
  0x4a   :  { %p3237_p6 = pnand %p3235_p5, %p3232_p4 }
  0x4c   :  { %3240 = shalt.err (!%p3237_p6)
}
  0x4d   :  { %s3241_s2 = scalar_lea.vmem %s76_s20, 6144  ;;  %p3246_p8 = scmp.lt.s32.totalorder %s76_s20, %s76_s20 }
  0x4e   :  { %p3242_p7 = scmp.ne.s32.totalorder %s76_s20, %s3241_s2  ;;  %p3247_p9 = scmp.lt.s32.totalorder %s3241_s2, %s3241_s2 }
  0x50   :  { %p3248_p10 = por %p3247_p9, %p3246_p8 }
  0x52   :  { %p3249_p11 = pnand %p3248_p10, %p3242_p7 }
  0x54   :  { %3252 = shalt.err (!%p3249_p11)
}
  0x55   :  { %81 = dma.hbm_to_vmem [thread:$0]  %s3782_s4, 6144, %s76_s20, [#allocation9], %s3309_s15, %s3309_s15, %s3310_s16  }
  0x56   :  { %s3253_s17 = scalar_lea.hbm %s3783_s5, 2048 }
  0x57   :  { %p3254_p12 = scmp.ne.s32.totalorder %s3783_s5, %s3253_s17  ;;  %p3257_p13 = scmp.lt.u32.totalorder %s3253_s17, %s3783_s5 }
  0x59   :  { %p3259_p0 = pnand %p3257_p13, %p3254_p12 }
  0x5b   :  { %3262 = shalt.err (!%p3259_p0)
}
  0x5c   :  { %s3263_s21 = scalar_lea.vmem %s3455_s23, 2048  ;;  %p3268_p2 = scmp.lt.s32.totalorder %s3455_s23, %s3455_s23 }
  0x5d   :  { %p3264_p1 = scmp.ne.s32.totalorder %s3455_s23, %s3263_s21  ;;  %p3269_p3 = scmp.lt.s32.totalorder %s3263_s21, %s3263_s21 }
  0x5f   :  { %p3270_p4 = por %p3269_p3, %p3268_p2 }
  0x61   :  { %p3271_p5 = pnand %p3270_p4, %p3264_p1 }
  0x63   :  { %3274 = shalt.err (!%p3271_p5)
}
  0x64   :  { %93 = dma.hbm_to_vmem [thread:$0]  %s3783_s5, 2048, %s3455_s23, [#allocation12], %s3309_s15, %s3309_s15, %s3310_s16  }
  0x65   :  { %3297 = dma.done.wait [#allocation3], 512  }
  0x66   :  { %3298 = vsyncadd [#allocation3], 4294966784 }
  0x67   :  { %3299 = dma.done.wait [#allocation6], 2048  }
  0x68   :  { %3300 = vsyncadd [#allocation6], 4294965248 }
  0x69   :  { %3301 = dma.done.wait [#allocation9], 9216  }
  0x6a   :  { %3302 = vsyncadd [#allocation9], 4294958080 }
  0x6b   :  { %3303 = dma.done.wait [#allocation12], 2048  }
  0x6c   :  { %3304 = vsyncadd [#allocation12], 4294965248  ;;  %vm136_vm0 = vcmask 523264   ;;  %v128_v0 = vld [vmem:[#allocation7] sm:$0xff]  ;;  %v129_v1 = vld [vmem:[#allocation7 + $0x8] sm:$0xff]  ;;  %vm238_vm1 = vcmask 261120  }
  0x6d   :  { %v124_v2 = vld [vmem:[#allocation2] sm:$0xff]  ;;  %v2728_v3 = vpack.c.bf16 %v129_v1, %v128_v0  ;;  %v3492_v4 = vld [vmem:[#allocation2 + $0x8] sm:$0xff]  ;;  %v130_v5 = vld [vmem:[#allocation7 + $0x10] sm:$0xff]  ;;  %s3315_s1 = smov [#allocation13]  }
  0x6e   :  { %v131_v6 = vld [vmem:[#allocation7 + $0x18] sm:$0xff]  ;;  %2258 = vmatprep.mubr.msk.f32.mxu0 %vm136_vm0, %v124_v2  ;;  %v2744_v7 = vpack.c.bf16 %v3492_v4, %v124_v2  ;;  %v3496_v9 = vld [vmem:[#allocation2 + $0x10] sm:$0xff]  ;;  %v3500_v11 = vld [vmem:[#allocation5] sm:$0xff] }
  0x6f   :  { %v2732_v8 = vpack.c.bf16 %v131_v6, %v130_v5  ;;  %v3498_v10 = vld [vmem:[#allocation2 + $0x18] sm:$0xff]  ;;  %2729 = vmatprep.subr.bf16.mxu0 %v2728_v3  ;;  %2272 = vmatprep.mubr.msk.f32.mxu1 %vm238_vm1, %v3500_v11  ;;  %v132_v13 = vld [vmem:[#allocation7 + $0x20] sm:$0xff]  ;;  %v133_v14 = vld [vmem:[#allocation7 + $0x28] sm:$0xff] }
  0x70   :  { %v2748_v12 = vpack.c.bf16 %v3498_v10, %v3496_v9  ;;  %2745 = vmatprep.subr.bf16.mxu1 %v2744_v7  ;;  %2731 = vmatpush3.bf16.msra.mxu0 %v2728_v3  ;;  %v2736_v15 = vpack.c.bf16 %v133_v14, %v132_v13  ;;  %v134_v16 = vld [vmem:[#allocation7 + $0x30] sm:$0xff]  ;;  %v135_v17 = vld [vmem:[#allocation7 + $0x38] sm:$0xff]  ;;  %v345_v18 = vld [vmem:[#allocation8 + $0x40] sm:$0xff] }
  0x71   :  { %2747 = vmatpush3.bf16.msra.mxu1 %v2744_v7  ;;  %2733 = vmatprep.subr.bf16.mxu0 %v2732_v8  ;;  %v346_v19 = vld [vmem:[#allocation8 + $0x48] sm:$0xff]  ;;  %v347_v21 = vld [vmem:[#allocation8 + $0x50] sm:$0xff]  ;;  %v348_v22 = vld [vmem:[#allocation8 + $0x58] sm:$0xff]  ;;  %v2740_v24 = vpack.c.bf16 %v135_v17, %v134_v16 }
  0x72   :  { %2749 = vmatprep.subr.bf16.mxu1 %v2748_v12  ;;  %v2752_v20 = vpack.c.bf16 %v346_v19, %v345_v18  ;;  %v3506_v23 = vld [vmem:[#allocation5 + $0x8] sm:$0xff]  ;;  %v3508_v25 = vld [vmem:[#allocation5 + $0x10] sm:$0xff]  ;;  %v2756_v26 = vpack.c.bf16 %v348_v22, %v347_v21  ;;  %v349_v27 = vld [vmem:[#allocation8 + $0x60] sm:$0xff] }
  0x73   :  { %v350_v28 = vld [vmem:[#allocation8 + $0x68] sm:$0xff]  ;;  %v3514_v29 = vld [vmem:[#allocation5 + $0x18] sm:$0xff]  ;;  %v351_v31 = vld [vmem:[#allocation8 + $0x70] sm:$0xff] }
  0x74   :  { %2735 = vmatpush3.bf16.msra.mxu0 %v2732_v8  ;;  %v2760_v30 = vpack.c.bf16 %v350_v28, %v349_v27  ;;  %v352_v32 = vld [vmem:[#allocation8 + $0x78] sm:$0xff]  ;;  %v336_v34 = vld [vmem:[#allocation8] sm:$0xff]  ;;  %v337_v35 = vld [vmem:[#allocation8 + $0x8] sm:$0xff] }
  0x75   :  { %2751 = vmatpush3.bf16.msra.mxu1 %v2748_v12  ;;  %2737 = vmatprep.subr.bf16.mxu0 %v2736_v15  ;;  %v2764_v33 = vpack.c.bf16 %v352_v32, %v351_v31  ;;  %v3523_v36 = vld [vmem:[#allocation5 + $0x20] sm:$0xff]  ;;  %v2768_v37 = vpack.c.bf16 %v337_v35, %v336_v34  ;;  %v3529_v38 = vld [vmem:[#allocation5 + $0x28] sm:$0xff]  ;;  %v338_v39 = vld [vmem:[#allocation8 + $0x10] sm:$0xff] }
  0x76   :  { %2753 = vmatprep.subr.bf16.mxu1 %v2752_v20  ;;  %v339_v40 = vld [vmem:[#allocation8 + $0x18] sm:$0xff]  ;;  %v3531_v41 = vld [vmem:[#allocation5 + $0x30] sm:$0xff]  ;;  %v340_v44 = vld [vmem:[#allocation8 + $0x20] sm:$0xff] }
  0x77   :  { %v2772_v42 = vpack.c.bf16 %v339_v40, %v338_v39  ;;  %v3537_v43 = vld [vmem:[#allocation5 + $0x38] sm:$0xff]  ;;  %v341_v45 = vld [vmem:[#allocation8 + $0x28] sm:$0xff]  ;;  %v342_v47 = vld [vmem:[#allocation8 + $0x30] sm:$0xff] }
  0x78   :  { %2273 = vmatmul.mubr.msk.f32.vlgmr.msra.gmra.mrb[0].mxu1 %vm238_vm1, %v3506_v23  ;;  %2739 = vmatpush3.bf16.msra.mxu0 %v2736_v15  ;;  %v2776_v46 = vpack.c.bf16 %v341_v45, %v340_v44  ;;  %v343_v48 = vld [vmem:[#allocation8 + $0x38] sm:$0xff]  ;;  %v638_v50 = vld [vmem:[#allocation8 + $0x80] sm:$0xff]  ;;  %v639_v51 = vld [vmem:[#allocation8 + $0x88] sm:$0xff] }
  0x79   :  { %2741 = vmatprep.subr.bf16.mxu0 %v2740_v24  ;;  %2275 = vmatprep.mubr.msk.f32.mxu1 %vm238_vm1, %v3508_v25  ;;  %v2780_v49 = vpack.c.bf16 %v343_v48, %v342_v47  ;;  %v2792_v52 = vpack.c.bf16 %v639_v51, %v638_v50  ;;  %v747_v53 = vld [vmem:[#allocation11] sm:$0xff]  ;;  %v748_v54 = vld [vmem:[#allocation11 + $0x8] sm:$0xff]  ;;  %v749_v55 = vld [vmem:[#allocation11 + $0x10] sm:$0xff] }
  0x7a   :  { %2755 = vmatpush3.bf16.msra.mxu1 %v2752_v20  ;;  %v3547_v56 = vpack.c.bf16 %v748_v54, %v747_v53  ;;  %v750_v57 = vld [vmem:[#allocation11 + $0x18] sm:$0xff]  ;;  %v751_v59 = vld [vmem:[#allocation11 + $0x20] sm:$0xff]  ;;  %v752_v60 = vld [vmem:[#allocation11 + $0x28] sm:$0xff] }
  0x7b   :  { %2757 = vmatprep.subr.bf16.mxu1 %v2756_v26  ;;  %v3549_v58 = vpack.c.bf16 %v750_v57, %v749_v55  ;;  %v3554_v61 = vpack.c.bf16 %v752_v60, %v751_v59  ;;  %v753_v62 = vld [vmem:[#allocation11 + $0x30] sm:$0xff]  ;;  %v754_v63 = vld [vmem:[#allocation11 + $0x38] sm:$0xff]  ;;  %v755_v1 = vld [vmem:[#allocation11 + $0x40] sm:$0xff] }
  0x7c   :  { %2743 = vmatpush3.bf16.msra.mxu0 %v2740_v24  ;;  %2276 = vmatmul.mubr.msk.f32.gmra.mrb[2].mxu1 %vm238_vm1, %v3514_v29  ;;  %v3558_v0 = vpack.c.bf16 %v754_v63, %v753_v62  ;;  %v758_v5 = vld [vmem:[#allocation11 + $0x58] sm:$0xff]  ;;  %v760_v8 = vld [vmem:[#allocation11 + $0x68] sm:$0xff]  ;;  %v640_v14 = vld [vmem:[#allocation8 + $0x90] sm:$0xff] }
  0x7d   :  { %2785 = vmatprep.subr.bf16.mxu0 %v2744_v7  ;;  %2294 = vmatprep.mubr.msk.f32.mxu1 %vm136_vm0, %v124_v2  ;;  %v756_v2 = vld [vmem:[#allocation11 + $0x48] sm:$0xff]  ;;  %v641_v15 = vld [vmem:[#allocation8 + $0x98] sm:$0xff]  ;;  %v642_v19 = vld [vmem:[#allocation8 + $0xa0] sm:$0xff] }
  0x7e   :  { %2759 = vmatpush3.bf16.msra.mxu1 %v2756_v26  ;;  %v3562_v3 = vpack.c.bf16 %v756_v2, %v755_v1  ;;  %v2796_v18 = vpack.c.bf16 %v641_v15, %v640_v14  ;;  %v643_v20 = vld [vmem:[#allocation8 + $0xa8] sm:$0xff]  ;;  %v644_v26 = vld [vmem:[#allocation8 + $0xb0] sm:$0xff]  ;;  %v645_v27 = vld [vmem:[#allocation8 + $0xb8] sm:$0xff] }
  0x7f   :  { %2259 = vmatmul.mubr.msk.f32.vlgmr.msra.gmra.mrb[0].mxu0 %vm136_vm0, %v3492_v4  ;;  %2761 = vmatprep.subr.bf16.mxu1 %v2760_v30  ;;  %v2800_v24 = vpack.c.bf16 %v643_v20, %v642_v19  ;;  %v2804_v31 = vpack.c.bf16 %v645_v27, %v644_v26 }
  0x80   :  { %2787 = vmatpush3.bf16.msra.mxu0 %v2744_v7  ;;  %2261 = vmatprep.mubr.msk.f32.mxu0 %vm136_vm0, %v3496_v9  ;;  %v759_v7 = vld [vmem:[#allocation11 + $0x60] sm:$0xff] }
  0x81   :  { %2789 = vmatprep.subr.bf16.mxu0 %v2748_v12 }
  0x82   :  { %2763 = vmatpush3.bf16.msra.mxu1 %v2760_v30 }
  0x83   :  { %2262 = vmatmul.mubr.msk.f32.gmra.mrb[2].mxu0 %vm136_vm0, %v3498_v10  ;;  %2765 = vmatprep.subr.bf16.mxu1 %v2764_v33 }
  0x84   :  { %2791 = vmatpush3.bf16.msra.mxu0 %v2748_v12  ;;  %2330 = vmatprep.mubr.msk.f32.mxu0 %vm238_vm1, %v3523_v36  ;;  %v762_v12 = vld [vmem:[#allocation11 + $0x78] sm:$0xff] }
  0x85   :  { %2809 = vmatprep.subr.bf16.mxu0 %v3547_v56 }
  0x86   :  { %2767 = vmatpush3.bf16.msra.mxu1 %v2764_v33 }
  0x87   :  { %2331 = vmatmul.mubr.msk.f32.vlgmr.msra.gmra.mrb[4].mxu0 %vm238_vm1, %v3529_v38  ;;  %2769 = vmatprep.subr.bf16.mxu1 %v2768_v37 }
  0x88   :  { %2333 = vmatprep.mubr.msk.f32.mxu0 %vm238_vm1, %v3531_v41  ;;  %2811 = vmatpush3.bf16.msra.mxu0 %v3547_v56 }
  0x89   :  { %2295 = vmatmul.mubr.msk.f32.vlgmr.msra.gmra.mrb[4].mxu1 %vm136_vm0, %v3492_v4  ;;  %2813 = vmatprep.subr.bf16.mxu0 %v3549_v58  ;;  %v757_v4 = vld [vmem:[#allocation11 + $0x50] sm:$0xff] }
  0x8a   :  { %2771 = vmatpush3.bf16.msra.mxu1 %v2768_v37  ;;  %2297 = vmatprep.mubr.msk.f32.mxu1 %vm136_vm0, %v3496_v9  ;;  %v3566_v6 = vpack.c.bf16 %v758_v5, %v757_v4  ;;  %v3570_v9 = vpack.c.bf16 %v760_v8, %v759_v7 }
  0x8b   :  { %2334 = vmatmul.mubr.msk.f32.gmra.mrb[6].mxu0 %vm238_vm1, %v3537_v43  ;;  %2773 = vmatprep.subr.bf16.mxu1 %v2772_v42 }
  0x8c   :  { %2815 = vmatpush3.bf16.msra.mxu0 %v3549_v58 }
  0x8d   :  { %2298 = vmatmul.mubr.msk.f32.gmra.mrb[6].mxu1 %vm136_vm0, %v3498_v10  ;;  %2817 = vmatprep.subr.bf16.mxu0 %v3554_v61  ;;  %v761_v10 = vld [vmem:[#allocation11 + $0x70] sm:$0xff] }
  0x8e   :  { %2775 = vmatpush3.bf16.msra.mxu1 %v2772_v42  ;;  %v3574_v13 = vpack.c.bf16 %v762_v12, %v761_v10 }
  0x8f   :  { %2777 = vmatprep.subr.bf16.mxu1 %v2776_v46 }
  0x90   :  { %2819 = vmatpush3.bf16.msra.mxu0 %v3554_v61 }
  0x91   :  { %2821 = vmatprep.subr.bf16.mxu0 %v3558_v0 }
  0x92   :  { %2779 = vmatpush3.bf16.msra.mxu1 %v2776_v46 }
  0x93   :  { %2781 = vmatprep.subr.bf16.mxu1 %v2780_v49 }
  0x94   :  { %2823 = vmatpush3.bf16.msra.mxu0 %v3558_v0 }
  0x95   :  { %2825 = vmatprep.subr.bf16.mxu0 %v3562_v3 }
  0x96   :  { %2783 = vmatpush3.bf16.msra.mxu1 %v2780_v49 }
  0x97   :  { %2793 = vmatprep.subr.bf16.mxu1 %v2792_v52 }
  0x98   :  { %2827 = vmatpush3.bf16.msra.mxu0 %v3562_v3 }
  0x99   :  { %2829 = vmatprep.subr.bf16.mxu0 %v3566_v6 }
  0x9c   :  { %2831 = vmatpush3.bf16.msra.mxu0 %v3566_v6 }
  0x9d   :  { %2833 = vmatprep.subr.bf16.mxu0 %v3570_v9 }
  0xa0   :  { %2835 = vmatpush3.bf16.msra.mxu0 %v3570_v9 }
  0xa1   :  { %2837 = vmatprep.subr.bf16.mxu0 %v3574_v13 }
  0xa4   :  { %2839 = vmatpush3.bf16.msra.mxu0 %v3574_v13 }
  0xa5   :  { %2841 = vmatprep.subr.bf16.mxu0 %v3547_v56 }
 0x14b   :  { %v2274_v16 = vpop.f32.mrb[0].mxu1 }
 0x14c   :  { %v317_v17 = vpop.f32.mrb[1].mxu1 }
 0x14d   :  { %2316 = vmatprep.mubr.msk.f32.mxu1 %vm136_vm0, %v317_v17 }
 0x14e   :  { %2317 = vmatmul.mubr.msk.f32.vlgmr.msra.gmra.mrb[4].mxu1 %vm136_vm0, %v2274_v16 }
 0x14f   :  { %2795 = vmatpush3.bf16.msra.mxu1 %v2792_v52  ;;  %v2277_v21 = vpop.f32.mrb[2].mxu1 }
 0x150   :  { %2797 = vmatprep.subr.bf16.mxu1 %v2796_v18  ;;  %v327_v22 = vpop.f32.mrb[3].mxu1 }
 0x151   :  { %2319 = vmatprep.mubr.msk.f32.mxu1 %vm136_vm0, %v327_v22 }
 0x152   :  { %v3583_v28 = vpop.f32.mrb[0].mxu0  ;;  %2320 = vmatmul.mubr.msk.f32.gmra.mrb[6].mxu1 %vm136_vm0, %v2277_v21 }
 0x153   :  { %2799 = vmatpush3.bf16.msra.mxu1 %v2796_v18  ;;  %v3586_v30 = vpop.f32.mrb[1].mxu0 }
 0x154   :  { %2801 = vmatprep.subr.bf16.mxu1 %v2800_v24 }
 0x156   :  { %v3588_v32 = vpop.f32.mrb[2].mxu0 }
 0x157   :  { %2803 = vmatpush3.bf16.msra.mxu1 %v2800_v24  ;;  %v3590_v33 = vpop.f32.mrb[3].mxu0 }
 0x158   :  { %2805 = vmatprep.subr.bf16.mxu1 %v2804_v31 }
 0x15a   :  { %v2332_v34 = vpop.f32.mrb[4].mxu0 }
 0x15b   :  { %2807 = vmatpush3.bf16.msra.mxu1 %v2804_v31  ;;  %v618_v35 = vpop.f32.mrb[5].mxu0 }
 0x15c   :  { %2352 = vmatprep.mubr.msk.f32.mxu1 %vm136_vm0, %v618_v35 }
 0x15e   :  { %2353 = vmatmul.mubr.msk.f32.vlgmr.msra.gmra.mrb[4].mxu1 %vm136_vm0, %v2332_v34  ;;  %v2335_v37 = vpop.f32.mrb[6].mxu0  ;;  %v966_v34 = vlaneseq }
 0x15f   :  { %v628_v39 = vpop.f32.mrb[7].mxu0 }
 0x160   :  { %2355 = vmatprep.mubr.msk.f32.mxu1 %vm136_vm0, %v628_v39  ;;  %v967_v35 = vshrl.u32 %v966_v34, 7  ;;  %v1079_v34 = vld [vmem:[#allocation10 + $0x20] sm:$0xff] }
 0x162   :  { %2356 = vmatmul.mubr.msk.f32.gmra.mrb[6].mxu1 %vm136_vm0, %v2335_v37  ;;  %v3618_v37 = vsub.s32 0, %v967_v35  ;;  %v1080_v35 = vld [vmem:[#allocation10 + $0x28] sm:$0xff] }
 0x163   :  { %2442 = vmatprep.mubr.msk.f32.mxu1 %vm238_vm1, %v3500_v11 }
 0x231   :  { %v2354_v40 = vpop.f32.mrb[4].mxu1 }
 0x232   :  { %v724_v42 = vpop.f32.mrb[5].mxu1 }
 0x233   :  { %2390 = vmatprep.mubr.f32.mxu0 %v724_v42 }
 0x234   :  { %2391 = vmatmul.mubr.f32.vlgmr.msra.gmra.mrb[8].mxu0 %v2354_v40 }
 0x235   :  { %v2357_v44 = vpop.f32.mrb[6].mxu1  ;;  %2843 = vmatpush3.bf16.msra.mxu0 %v3547_v56 }
 0x236   :  { %v734_v45 = vpop.f32.mrb[7].mxu1  ;;  %2845 = vmatprep.subr.bf16.mxu0 %v3549_v58 }
 0x237   :  { %2393 = vmatprep.mubr.f32.mxu0 %v734_v45 }
 0x238   :  { %2394 = vmatmul.mubr.f32.gmra.mrb[10].mxu0 %v2357_v44 }
 0x239   :  { %2847 = vmatpush3.bf16.msra.mxu0 %v3549_v58 }
 0x23a   :  { %2849 = vmatprep.subr.bf16.mxu0 %v3554_v61 }
 0x23d   :  { %2851 = vmatpush3.bf16.msra.mxu0 %v3554_v61 }
 0x23e   :  { %2853 = vmatprep.subr.bf16.mxu0 %v3558_v0 }
 0x241   :  { %2855 = vmatpush3.bf16.msra.mxu0 %v3558_v0 }
 0x242   :  { %2857 = vmatprep.subr.bf16.mxu0 %v3562_v3 }
 0x245   :  { %2859 = vmatpush3.bf16.msra.mxu0 %v3562_v3 }
 0x246   :  { %2861 = vmatprep.subr.bf16.mxu0 %v3566_v6 }
 0x249   :  { %2863 = vmatpush3.bf16.msra.mxu0 %v3566_v6 }
 0x24a   :  { %2865 = vmatprep.subr.bf16.mxu0 %v3570_v9 }
 0x24d   :  { %2867 = vmatpush3.bf16.msra.mxu0 %v3570_v9 }
 0x24e   :  { %2869 = vmatprep.subr.bf16.mxu0 %v3574_v13 }
 0x251   :  { %2871 = vmatpush3.bf16.msra.mxu0 %v3574_v13 }
 0x307   :  { %v2392_v11 = vpop.f32.mrb[8].mxu0 }
 0x308   :  { %v829_v46 = vpop.f32.mrb[9].mxu0 }
 0x309   :  { %v848_v47 = vadd.f32 %v2392_v11, %v829_v46 }
 0x30b   :  { %v2395_v48 = vpop.f32.mrb[10].mxu0 }
 0x30c   :  { %v839_v49 = vpop.f32.mrb[11].mxu0 }
 0x30d   :  { %v849_v50 = vadd.f32 %v848_v47, %v839_v49 }
 0x30f   :  { %v850_v51 = vadd.f32 %v2395_v48, %v849_v50 }
 0x311   :  { %v851_v52 = vrot.slane %v850_v51, 4 }
 0x313   :  { %v852_v53 = vadd.f32 %v851_v52, %v850_v51 }
 0x315   :  { %v853_v54 = vrot.slane %v852_v53, 2 }
 0x317   :  { %v854_v55 = vadd.f32 %v853_v54, %v852_v53 }
 0x319   :  { %v855_v57 = vrot.slane %v854_v55, 1 }
 0x31b   :  { %v856_v59 = vadd.f32 %v855_v57, %v854_v55 }
 0x31d   :  { %v857_v60 = vmul.f32 0.001953125, %v856_v59  ;;  %v1092_v59 = vld [vmem:[#allocation10 + $0x80] sm:$0xff] }
 0x31f   :  { %v858_v62 = vsub.f32 %v724_v42, %v857_v60  ;;  %v859_v63 = vsub.f32 %v2354_v40, %v857_v60  ;;  %v860_v1 = vsub.f32 %v734_v45, %v857_v60  ;;  %v861_v2 = vsub.f32 %v2357_v44, %v857_v60  ;;  %v1971_v44 = vld [vmem:[%s3787_s9] ss:$0 sm:$0xff]  ;;  %v1093_v60 = vld [vmem:[#allocation10 + $0x88] sm:$0xff] }
 0x321   :  { %v862_v4 = vmul.f32 %v858_v62, %v858_v62  ;;  %v863_v5 = vmul.f32 %v859_v63, %v859_v63  ;;  %v864_v7 = vmul.f32 %v860_v1, %v860_v1  ;;  %v865_v8 = vmul.f32 %v861_v2, %v861_v2 }
 0x323   :  { %2428 = vmatprep.mubr.f32.mxu0 %v862_v4 }
 0x324   :  { %2429 = vmatmul.mubr.f32.vlgmr.msra.gmra.mrb[12].mxu0 %v863_v5  ;;  %v1096_v5 = vld [vmem:[#allocation10 + $0xa0] sm:$0xff] }
 0x325   :  { %2431 = vmatprep.mubr.f32.mxu0 %v864_v7  ;;  %v1097_v7 = vld [vmem:[#allocation10 + $0xa8] sm:$0xff] }
 0x328   :  { %2432 = vmatmul.mubr.f32.gmra.mrb[14].mxu0 %v865_v8  ;;  %v2888_v8 = vpack.c.bf16 %v1097_v7, %v1096_v5  ;;  %v1368_v7 = vld [vmem:[#allocation10 + $0x120] sm:$0xff] }
 0x329   :  { %2532 = vmatprep.mubr.msk.f32.mxu0 %vm238_vm1, %v3523_v36  ;;  %v961_v36 = vld [vmem:[%s3786_s8] sm:$0x1] }
 0x3f7   :  { %v2430_v10 = vpop.f32.mrb[12].mxu0 }
 0x3f8   :  { %v932_v12 = vpop.f32.mrb[13].mxu0 }
 0x3f9   :  { %v951_v14 = vadd.f32 %v2430_v10, %v932_v12  ;;  %v1098_v10 = vld [vmem:[#allocation10 + $0xb0] sm:$0xff]  ;;  %v1099_v12 = vld [vmem:[#allocation10 + $0xb8] sm:$0xff] }
 0x3fb   :  { %v2433_v15 = vpop.f32.mrb[14].mxu0 }
 0x3fc   :  { %v942_v16 = vpop.f32.mrb[15].mxu0 }
 0x3fd   :  { %v952_v17 = vadd.f32 %v951_v14, %v942_v16  ;;  %v1102_v14 = vld [vmem:[#allocation10 + $0xd0] sm:$0xff]  ;;  %v1105_v16 = vld [vmem:[#allocation10 + $0xe8] sm:$0xff] }
 0x3ff   :  { %v953_v18 = vadd.f32 %v2433_v15, %v952_v17  ;;  %v1104_v15 = vld [vmem:[#allocation10 + $0xe0] sm:$0xff] }
 0x400   :  { %v2904_v17 = vpack.c.bf16 %v1105_v16, %v1104_v15  ;;  %v1373_v15 = vld [vmem:[#allocation10 + $0x148] sm:$0xff] }
 0x401   :  { %v954_v19 = vrot.slane %v953_v18, 4 }
 0x403   :  { %v955_v20 = vadd.f32 %v954_v19, %v953_v18  ;;  %v1106_v18 = vld [vmem:[#allocation10 + $0xf0] sm:$0xff]  ;;  %v1107_v19 = vld [vmem:[#allocation10 + $0xf8] sm:$0xff] }
 0x405   :  { %v956_v21 = vrot.slane %v955_v20, 2 }
 0x407   :  { %v957_v22 = vadd.f32 %v956_v21, %v955_v20  ;;  %v2908_v20 = vpack.c.bf16 %v1107_v19, %v1106_v18  ;;  %v1075_v21 = vld [vmem:[#allocation10] sm:$0xff]  ;;  %v1375_v18 = vld [vmem:[#allocation10 + $0x158] sm:$0xff] }
 0x409   :  { %v958_v24 = vrot.slane %v957_v22, 1 }
 0x40b   :  { %v959_v26 = vadd.f32 %v958_v24, %v957_v22  ;;  %v1076_v22 = vld [vmem:[#allocation10 + $0x8] sm:$0xff] }
 0x40c   :  { %v2912_v24 = vpack.c.bf16 %v1076_v22, %v1075_v21  ;;  %v1377_v21 = vld [vmem:[#allocation10 + $0x168] sm:$0xff] }
 0x40d   :  { %v960_v27 = vmul.f32 0.001953125, %v959_v26  ;;  %v1077_v26 = vld [vmem:[#allocation10 + $0x10] sm:$0xff] }
 0x40f   :  { %v962_v31 = vadd.f32 1e-05, %v960_v27  ;;  %v1078_v27 = vld [vmem:[#allocation10 + $0x18] sm:$0xff] }
 0x411   :  { %3137 = vrsqrt.f32 %v962_v31  ;;  %v2916_v31 = vpack.c.bf16 %v1078_v27, %v1077_v26  ;;  %v1379_v26 = vld [vmem:[#allocation10 + $0x178] sm:$0xff] }
 0x41b   :  { %v3138_v39 = vpop.eup %3137 }
 0x41c   :  { %v964_v40 = vmul.f32 %v3138_v39, %v961_v36  ;;  %v2920_v36 = vpack.c.bf16 %v1080_v35, %v1079_v34  ;;  %v1081_v39 = vld [vmem:[#allocation10 + $0x30] sm:$0xff] }
 0x41e   :  { %v969_v42 = vrot.slane %v964_v40, %v3618_v37  ;;  %v1082_v40 = vld [vmem:[#allocation10 + $0x38] sm:$0xff] }
 0x420   :  { %v971_v45 = vmul.f32 %v969_v42, %v858_v62  ;;  %v972_v11 = vmul.f32 %v969_v42, %v859_v63  ;;  %v973_v46 = vmul.f32 %v969_v42, %v860_v1  ;;  %v974_v47 = vmul.f32 %v969_v42, %v861_v2  ;;  %v1094_v1 = vld [vmem:[#allocation10 + $0x90] sm:$0xff]  ;;  %v1095_v2 = vld [vmem:[#allocation10 + $0x98] sm:$0xff] }
 0x421   :  { %v2880_v63 = vpack.c.bf16 %v1093_v60, %v1092_v59  ;;  %v2884_v4 = vpack.c.bf16 %v1095_v2, %v1094_v1  ;;  %v2924_v42 = vpack.c.bf16 %v1082_v40, %v1081_v39  ;;  %v1366_v60 = vld [vmem:[#allocation10 + $0x110] sm:$0xff] }
 0x422   :  { %v982_v48 = vadd.f32 %v1971_v44, %v971_v45  ;;  %v3624_v49 = vadd.f32 %v1971_v44, %v972_v11  ;;  %v3626_v50 = vadd.f32 %v1971_v44, %v973_v46  ;;  %v3628_v51 = vadd.f32 %v1971_v44, %v974_v47  ;;  %v1083_v44 = vld [vmem:[#allocation10 + $0x40] sm:$0xff]  ;;  %v1084_v45 = vld [vmem:[#allocation10 + $0x48] sm:$0xff]  ;;  %v1085_v46 = vld [vmem:[#allocation10 + $0x50] sm:$0xff] }
 0x423   :  { %v2928_v11 = vpack.c.bf16 %v1084_v45, %v1083_v44  ;;  %v1086_v47 = vld [vmem:[#allocation10 + $0x58] sm:$0xff] }
 0x424   :  { %v986_v52 = vmax.f32 %v982_v48, 0.0  ;;  %v987_v53 = vmax.f32 %v3624_v49, 0.0  ;;  %v988_v54 = vmax.f32 %v3626_v50, 0.0  ;;  %v989_v55 = vmax.f32 %v3628_v51, 0.0  ;;  %v1087_v49 = vld [vmem:[#allocation10 + $0x60] sm:$0xff]  ;;  %v1088_v50 = vld [vmem:[#allocation10 + $0x68] sm:$0xff] }
 0x425   :  { %v2932_v48 = vpack.c.bf16 %v1086_v47, %v1085_v46  ;;  %v1089_v51 = vld [vmem:[#allocation10 + $0x70] sm:$0xff] }
 0x426   :  { %v2872_v57 = vpack.c.bf16 %v987_v53, %v986_v52  ;;  %v2876_v62 = vpack.c.bf16 %v989_v55, %v988_v54 }
 0x428   :  { %2873 = vmatprep.subr.bf16.mxu1 %v2872_v57  ;;  %2945 = vmatprep.subr.bf16.mxu0 %v2872_v57 }
 0x429   :  { %2875 = vmatpush3.bf16.msra.mxu1 %v2872_v57  ;;  %2947 = vmatpush3.bf16.msra.mxu0 %v2872_v57  ;;  %v1365_v57 = vld [vmem:[#allocation10 + $0x108] sm:$0xff] }
 0x42a   :  { %2877 = vmatprep.subr.bf16.mxu1 %v2876_v62  ;;  %2949 = vmatprep.subr.bf16.mxu0 %v2876_v62 }
 0x42d   :  { %2879 = vmatpush3.bf16.msra.mxu1 %v2876_v62  ;;  %2951 = vmatpush3.bf16.msra.mxu0 %v2876_v62  ;;  %v1367_v62 = vld [vmem:[#allocation10 + $0x118] sm:$0xff] }
 0x42e   :  { %2881 = vmatprep.subr.bf16.mxu1 %v2880_v63  ;;  %2985 = vmatprep.subr.bf16.mxu0 %v3547_v56 }
 0x430   :  { %2443 = vmatmul.mubr.msk.f32.vlgmr.msra.gmra.mrb[8].mxu1 %vm238_vm1, %v3506_v23  ;;  %2533 = vmatmul.mubr.msk.f32.vlgmr.msra.gmra.mrb[16].mxu0 %vm238_vm1, %v3529_v38  ;;  %v2892_v23 = vpack.c.bf16 %v1099_v12, %v1098_v10  ;;  %v1101_v38 = vld [vmem:[#allocation10 + $0xc8] sm:$0xff] }
 0x431   :  { %2883 = vmatpush3.bf16.msra.mxu1 %v2880_v63  ;;  %2445 = vmatprep.mubr.msk.f32.mxu1 %vm238_vm1, %v3508_v25  ;;  %v1100_v25 = vld [vmem:[#allocation10 + $0xc0] sm:$0xff] }
 0x432   :  { %2885 = vmatprep.subr.bf16.mxu1 %v2884_v4  ;;  %2535 = vmatprep.mubr.msk.f32.mxu0 %vm238_vm1, %v3531_v41  ;;  %v2896_v41 = vpack.c.bf16 %v1101_v38, %v1100_v25 }
 0x433   :  { %2987 = vmatpush3.bf16.msra.mxu0 %v3547_v56 }
 0x434   :  { %2446 = vmatmul.mubr.msk.f32.gmra.mrb[10].mxu1 %vm238_vm1, %v3514_v29  ;;  %2536 = vmatmul.mubr.msk.f32.gmra.mrb[18].mxu0 %vm238_vm1, %v3537_v43  ;;  %v1103_v29 = vld [vmem:[#allocation10 + $0xd8] sm:$0xff] }
 0x435   :  { %2887 = vmatpush3.bf16.msra.mxu1 %v2884_v4  ;;  %2480 = vmatprep.mubr.f32.mxu1 %v986_v52  ;;  %v2900_v43 = vpack.c.bf16 %v1103_v29, %v1102_v14  ;;  %v2936_v52 = vpack.c.bf16 %v1088_v50, %v1087_v49  ;;  %v2956_v4 = vpack.c.bf16 %v1367_v62, %v1366_v60  ;;  %v1371_v14 = vld [vmem:[#allocation10 + $0x138] sm:$0xff] }
 0x436   :  { %2889 = vmatprep.subr.bf16.mxu1 %v2888_v8  ;;  %2989 = vmatprep.subr.bf16.mxu0 %v3549_v58 }
 0x437   :  { %2991 = vmatpush3.bf16.msra.mxu0 %v3549_v58 }
 0x438   :  { %2993 = vmatprep.subr.bf16.mxu0 %v3554_v61 }
 0x439   :  { %2891 = vmatpush3.bf16.msra.mxu1 %v2888_v8  ;;  %v1369_v8 = vld [vmem:[#allocation10 + $0x128] sm:$0xff] }
 0x43a   :  { %2893 = vmatprep.subr.bf16.mxu1 %v2892_v23 }
 0x43b   :  { %2995 = vmatpush3.bf16.msra.mxu0 %v3554_v61 }
 0x43c   :  { %2997 = vmatprep.subr.bf16.mxu0 %v3558_v0 }
 0x43d   :  { %2895 = vmatpush3.bf16.msra.mxu1 %v2892_v23  ;;  %v2960_v23 = vpack.c.bf16 %v1369_v8, %v1368_v7 }
 0x43e   :  { %2897 = vmatprep.subr.bf16.mxu1 %v2896_v41 }
 0x43f   :  { %2999 = vmatpush3.bf16.msra.mxu0 %v3558_v0 }
 0x440   :  { %3001 = vmatprep.subr.bf16.mxu0 %v3562_v3 }
 0x441   :  { %2899 = vmatpush3.bf16.msra.mxu1 %v2896_v41  ;;  %v1370_v41 = vld [vmem:[#allocation10 + $0x130] sm:$0xff] }
 0x442   :  { %2901 = vmatprep.subr.bf16.mxu1 %v2900_v43  ;;  %v2964_v29 = vpack.c.bf16 %v1371_v14, %v1370_v41 }
 0x443   :  { %3003 = vmatpush3.bf16.msra.mxu0 %v3562_v3 }
 0x444   :  { %3005 = vmatprep.subr.bf16.mxu0 %v3566_v6 }
 0x445   :  { %2903 = vmatpush3.bf16.msra.mxu1 %v2900_v43  ;;  %v1372_v43 = vld [vmem:[#allocation10 + $0x140] sm:$0xff] }
 0x446   :  { %2905 = vmatprep.subr.bf16.mxu1 %v2904_v17  ;;  %v2968_v16 = vpack.c.bf16 %v1373_v15, %v1372_v43 }
 0x447   :  { %3007 = vmatpush3.bf16.msra.mxu0 %v3566_v6 }
 0x448   :  { %3009 = vmatprep.subr.bf16.mxu0 %v3570_v9 }
 0x449   :  { %2907 = vmatpush3.bf16.msra.mxu1 %v2904_v17  ;;  %v1374_v17 = vld [vmem:[#allocation10 + $0x150] sm:$0xff] }
 0x44a   :  { %2909 = vmatprep.subr.bf16.mxu1 %v2908_v20  ;;  %v2972_v19 = vpack.c.bf16 %v1375_v18, %v1374_v17 }
 0x44b   :  { %3011 = vmatpush3.bf16.msra.mxu0 %v3570_v9 }
 0x44c   :  { %3013 = vmatprep.subr.bf16.mxu0 %v3574_v13 }
 0x44d   :  { %2911 = vmatpush3.bf16.msra.mxu1 %v2908_v20  ;;  %v1376_v20 = vld [vmem:[#allocation10 + $0x160] sm:$0xff] }
 0x44e   :  { %2913 = vmatprep.subr.bf16.mxu1 %v2912_v24  ;;  %v2976_v22 = vpack.c.bf16 %v1377_v21, %v1376_v20 }
 0x44f   :  { %3015 = vmatpush3.bf16.msra.mxu0 %v3574_v13 }
 0x450   :  { %2481 = vmatmul.mubr.f32.vlgmr.msra.gmra.mrb[12].mxu1 %v987_v53  ;;  %3017 = vmatprep.subr.bf16.mxu0 %v3547_v56  ;;  %v1090_v53 = vld [vmem:[#allocation10 + $0x78] sm:$0xff] }
 0x451   :  { %2483 = vmatprep.mubr.f32.mxu1 %v988_v54  ;;  %2915 = vmatpush3.bf16.msra.mxu1 %v2912_v24  ;;  %v2940_v54 = vpack.c.bf16 %v1090_v53, %v1089_v51  ;;  %v1378_v24 = vld [vmem:[#allocation10 + $0x170] sm:$0xff] }
 0x452   :  { %2917 = vmatprep.subr.bf16.mxu1 %v2916_v31  ;;  %v2980_v27 = vpack.c.bf16 %v1379_v26, %v1378_v24 }
 0x454   :  { %2484 = vmatmul.mubr.f32.gmra.mrb[14].mxu1 %v989_v55  ;;  %v1364_v55 = vld [vmem:[#allocation10 + $0x100] sm:$0xff] }
 0x455   :  { %2919 = vmatpush3.bf16.msra.mxu1 %v2916_v31  ;;  %v2952_v59 = vpack.c.bf16 %v1365_v57, %v1364_v55 }
 0x456   :  { %2921 = vmatprep.subr.bf16.mxu1 %v2920_v36 }
 0x459   :  { %2923 = vmatpush3.bf16.msra.mxu1 %v2920_v36 }
 0x45a   :  { %2925 = vmatprep.subr.bf16.mxu1 %v2924_v42 }
 0x45d   :  { %2927 = vmatpush3.bf16.msra.mxu1 %v2924_v42 }
 0x45e   :  { %2929 = vmatprep.subr.bf16.mxu1 %v2928_v11 }
 0x461   :  { %2931 = vmatpush3.bf16.msra.mxu1 %v2928_v11 }
 0x462   :  { %2933 = vmatprep.subr.bf16.mxu1 %v2932_v48 }
 0x465   :  { %2935 = vmatpush3.bf16.msra.mxu1 %v2932_v48 }
 0x466   :  { %2937 = vmatprep.subr.bf16.mxu1 %v2936_v52 }
 0x469   :  { %2939 = vmatpush3.bf16.msra.mxu1 %v2936_v52 }
 0x46a   :  { %2941 = vmatprep.subr.bf16.mxu1 %v2940_v54 }
 0x46d   :  { %2943 = vmatpush3.bf16.msra.mxu1 %v2940_v54 }
 0x46e   :  { %2953 = vmatprep.subr.bf16.mxu1 %v2952_v59 }
 0x503   :  { %v2444_v63 = vpop.f32.mrb[8].mxu1  ;;  %v2534_v1 = vpop.f32.mrb[16].mxu0 }
 0x504   :  { %v1056_v2 = vpop.f32.mrb[9].mxu1  ;;  %v1344_v5 = vpop.f32.mrb[17].mxu0 }
 0x505   :  { %2518 = vmatprep.mubr.f32.mxu1 %v1056_v2 }
 0x506   :  { %2519 = vmatmul.mubr.f32.vlgmr.msra.gmra.mrb[12].mxu1 %v2444_v63 }
 0x507   :  { %2955 = vmatpush3.bf16.msra.mxu1 %v2952_v59  ;;  %v2447_v10 = vpop.f32.mrb[10].mxu1  ;;  %v2537_v12 = vpop.f32.mrb[18].mxu0 }
 0x508   :  { %2957 = vmatprep.subr.bf16.mxu1 %v2956_v4  ;;  %v1066_v25 = vpop.f32.mrb[11].mxu1  ;;  %v1354_v38 = vpop.f32.mrb[19].mxu0 }
 0x509   :  { %2521 = vmatprep.mubr.f32.mxu1 %v1066_v25 }
 0x50a   :  { %2522 = vmatmul.mubr.f32.gmra.mrb[14].mxu1 %v2447_v10 }
 0x50b   :  { %2959 = vmatpush3.bf16.msra.mxu1 %v2956_v4  ;;  %2570 = vmatprep.mubr.f32.mxu1 %v1344_v5 }
 0x50c   :  { %2961 = vmatprep.subr.bf16.mxu1 %v2960_v23 }
 0x50f   :  { %2963 = vmatpush3.bf16.msra.mxu1 %v2960_v23 }
 0x510   :  { %2965 = vmatprep.subr.bf16.mxu1 %v2964_v29 }
 0x513   :  { %2967 = vmatpush3.bf16.msra.mxu1 %v2964_v29 }
 0x514   :  { %2969 = vmatprep.subr.bf16.mxu1 %v2968_v16 }
 0x517   :  { %2971 = vmatpush3.bf16.msra.mxu1 %v2968_v16 }
 0x518   :  { %2973 = vmatprep.subr.bf16.mxu1 %v2972_v19 }
 0x51b   :  { %2975 = vmatpush3.bf16.msra.mxu1 %v2972_v19 }
 0x51c   :  { %2977 = vmatprep.subr.bf16.mxu1 %v2976_v22 }
 0x51f   :  { %2979 = vmatpush3.bf16.msra.mxu1 %v2976_v22 }
 0x520   :  { %2981 = vmatprep.subr.bf16.mxu1 %v2980_v27 }
 0x523   :  { %2983 = vmatpush3.bf16.msra.mxu1 %v2980_v27 }
 0x524   :  { %3081 = vmatprep.subr.bf16.mxu1 %v3547_v56 }
 0x526   :  { %2571 = vmatmul.mubr.f32.vlgmr.msra.gmra.mrb[12].mxu1 %v2534_v1 }
 0x527   :  { %2573 = vmatprep.mubr.f32.mxu1 %v1354_v38  ;;  %3083 = vmatpush3.bf16.msra.mxu1 %v3547_v56 }
 0x528   :  { %3085 = vmatprep.subr.bf16.mxu1 %v3549_v58 }
 0x52a   :  { %2574 = vmatmul.mubr.f32.gmra.mrb[14].mxu1 %v2537_v12 }
 0x52b   :  { %3087 = vmatpush3.bf16.msra.mxu1 %v3549_v58 }
 0x52c   :  { %3089 = vmatprep.subr.bf16.mxu1 %v3554_v61 }
 0x52f   :  { %3091 = vmatpush3.bf16.msra.mxu1 %v3554_v61 }
 0x530   :  { %3093 = vmatprep.subr.bf16.mxu1 %v3558_v0 }
 0x533   :  { %3095 = vmatpush3.bf16.msra.mxu1 %v3558_v0 }
 0x534   :  { %3097 = vmatprep.subr.bf16.mxu1 %v3562_v3 }
 0x537   :  { %3099 = vmatpush3.bf16.msra.mxu1 %v3562_v3 }
 0x538   :  { %3101 = vmatprep.subr.bf16.mxu1 %v3566_v6 }
 0x53b   :  { %3103 = vmatpush3.bf16.msra.mxu1 %v3566_v6 }
 0x53c   :  { %3105 = vmatprep.subr.bf16.mxu1 %v3570_v9 }
 0x53f   :  { %3107 = vmatpush3.bf16.msra.mxu1 %v3570_v9 }
 0x540   :  { %3109 = vmatprep.subr.bf16.mxu1 %v3574_v13 }
 0x543   :  { %3111 = vmatpush3.bf16.msra.mxu1 %v3574_v13 }
 0x5f9   :  { %v2572_v31 = vpop.f32.mrb[12].mxu1 }
 0x5fa   :  { %v1446_v34 = vpop.f32.mrb[13].mxu1 }
 0x5fb   :  { %2608 = vmatprep.mubr.f32.mxu0 %v1446_v34 }
 0x5fc   :  { %2609 = vmatmul.mubr.f32.vlgmr.msra.gmra.mrb[20].mxu0 %v2572_v31 }
 0x5fd   :  { %v2575_v35 = vpop.f32.mrb[14].mxu1  ;;  %3019 = vmatpush3.bf16.msra.mxu0 %v3547_v56 }
 0x5fe   :  { %v1456_v36 = vpop.f32.mrb[15].mxu1  ;;  %3021 = vmatprep.subr.bf16.mxu0 %v3549_v58 }
 0x5ff   :  { %2611 = vmatprep.mubr.f32.mxu0 %v1456_v36 }
 0x600   :  { %2612 = vmatmul.mubr.f32.gmra.mrb[22].mxu0 %v2575_v35 }
 0x601   :  { %3023 = vmatpush3.bf16.msra.mxu0 %v3549_v58 }
 0x602   :  { %3025 = vmatprep.subr.bf16.mxu0 %v3554_v61 }
 0x605   :  { %3027 = vmatpush3.bf16.msra.mxu0 %v3554_v61 }
 0x606   :  { %3029 = vmatprep.subr.bf16.mxu0 %v3558_v0 }
 0x609   :  { %3031 = vmatpush3.bf16.msra.mxu0 %v3558_v0 }
 0x60a   :  { %3033 = vmatprep.subr.bf16.mxu0 %v3562_v3 }
 0x60d   :  { %3035 = vmatpush3.bf16.msra.mxu0 %v3562_v3 }
 0x60e   :  { %3037 = vmatprep.subr.bf16.mxu0 %v3566_v6 }
 0x611   :  { %3039 = vmatpush3.bf16.msra.mxu0 %v3566_v6 }
 0x612   :  { %3041 = vmatprep.subr.bf16.mxu0 %v3570_v9 }
 0x615   :  { %3043 = vmatpush3.bf16.msra.mxu0 %v3570_v9 }
 0x616   :  { %3045 = vmatprep.subr.bf16.mxu0 %v3574_v13 }
 0x619   :  { %3047 = vmatpush3.bf16.msra.mxu0 %v3574_v13 }
 0x61a   :  { %3049 = vmatprep.subr.bf16.mxu0 %v3547_v56 }
 0x6cf   :  { %v2610_v39 = vpop.f32.mrb[20].mxu0 }
 0x6d0   :  { %v1535_v40 = vpop.f32.mrb[21].mxu0 }
 0x6d1   :  { %v1554_v42 = vadd.f32 %v2610_v39, %v1535_v40 }
 0x6d3   :  { %v2613_v44 = vpop.f32.mrb[22].mxu0 }
 0x6d4   :  { %v1545_v45 = vpop.f32.mrb[23].mxu0 }
 0x6d5   :  { %v1555_v11 = vadd.f32 %v1554_v42, %v1545_v45 }
 0x6d7   :  { %v1556_v46 = vadd.f32 %v2613_v44, %v1555_v11 }
 0x6d9   :  { %v1557_v47 = vrot.slane %v1556_v46, 4 }
 0x6db   :  { %v1558_v48 = vadd.f32 %v1557_v47, %v1556_v46 }
 0x6dd   :  { %v1559_v49 = vrot.slane %v1558_v48, 2 }
 0x6df   :  { %v1560_v50 = vadd.f32 %v1559_v49, %v1558_v48 }
 0x6e1   :  { %v1561_v52 = vrot.slane %v1560_v50, 1 }
 0x6e3   :  { %v1562_v51 = vadd.f32 %v1561_v52, %v1560_v50 }
 0x6e5   :  { %v1563_v53 = vmul.f32 0.001953125, %v1562_v51  ;;  %v1667_v51 = vld [vmem:[%s3788_s10] sm:$0x1] }
 0x6e7   :  { %v3706_v54 = vsub.f32 %v1446_v34, %v1563_v53  ;;  %v3708_v55 = vsub.f32 %v2572_v31, %v1563_v53  ;;  %v3710_v57 = vsub.f32 %v1456_v36, %v1563_v53  ;;  %v3712_v59 = vsub.f32 %v2575_v35, %v1563_v53 }
 0x6e9   :  { %v1568_v60 = vmul.f32 %v3706_v54, %v3706_v54  ;;  %v1569_v62 = vmul.f32 %v3708_v55, %v3708_v55  ;;  %v1570_v63 = vmul.f32 %v3710_v57, %v3710_v57  ;;  %v1571_v1 = vmul.f32 %v3712_v59, %v3712_v59 }
 0x6eb   :  { %2646 = vmatprep.mubr.f32.mxu0 %v1568_v60  ;;  %v1890_v60 = vld [vmem:[%s3784_s6] sm:$0x1] }
 0x6ec   :  { %2647 = vmatmul.mubr.f32.vlgmr.msra.gmra.mrb[24].mxu0 %v1569_v62 }
 0x6ed   :  { %3051 = vmatpush3.bf16.msra.mxu0 %v3547_v56  ;;  %2649 = vmatprep.mubr.f32.mxu0 %v1570_v63 }
 0x6ee   :  { %3053 = vmatprep.subr.bf16.mxu0 %v3549_v58 }
 0x6f0   :  { %2650 = vmatmul.mubr.f32.gmra.mrb[26].mxu0 %v1571_v1 }
 0x6f1   :  { %3055 = vmatpush3.bf16.msra.mxu0 %v3549_v58  ;;  %2684 = vmatprep.mubr.f32.mxu0 %v3586_v30 }
 0x6f2   :  { %3057 = vmatprep.subr.bf16.mxu0 %v3554_v61 }
 0x6f5   :  { %3059 = vmatpush3.bf16.msra.mxu0 %v3554_v61 }
 0x6f6   :  { %3061 = vmatprep.subr.bf16.mxu0 %v3558_v0 }
 0x6f9   :  { %3063 = vmatpush3.bf16.msra.mxu0 %v3558_v0 }
 0x6fa   :  { %3065 = vmatprep.subr.bf16.mxu0 %v3562_v3 }
 0x6fd   :  { %3067 = vmatpush3.bf16.msra.mxu0 %v3562_v3 }
 0x6fe   :  { %3069 = vmatprep.subr.bf16.mxu0 %v3566_v6 }
 0x701   :  { %3071 = vmatpush3.bf16.msra.mxu0 %v3566_v6 }
 0x702   :  { %3073 = vmatprep.subr.bf16.mxu0 %v3570_v9 }
 0x705   :  { %3075 = vmatpush3.bf16.msra.mxu0 %v3570_v9 }
 0x706   :  { %3077 = vmatprep.subr.bf16.mxu0 %v3574_v13 }
 0x709   :  { %3079 = vmatpush3.bf16.msra.mxu0 %v3574_v13 }
 0x70c   :  { %2685 = vmatmul.mubr.f32.vlgmr.msra.gmra.mrb[28].mxu0 %v3583_v28 }
 0x70d   :  { %2687 = vmatprep.mubr.f32.mxu0 %v3590_v33 }
 0x710   :  { %2688 = vmatmul.mubr.f32.gmra.mrb[30].mxu0 %v3588_v32 }
 0x7bf   :  { %v2648_v56 = vpop.f32.mrb[24].mxu0 }
 0x7c0   :  { %v1638_v58 = vpop.f32.mrb[25].mxu0 }
 0x7c1   :  { %v1657_v61 = vadd.f32 %v2648_v56, %v1638_v58 }
 0x7c3   :  { %v2651_v0 = vpop.f32.mrb[26].mxu0 }
 0x7c4   :  { %v1648_v3 = vpop.f32.mrb[27].mxu0 }
 0x7c5   :  { %v1658_v6 = vadd.f32 %v1657_v61, %v1648_v3  ;;  %v1980_v3 = vld [vmem:[%s3789_s11] ss:$0 sm:$0xff]  ;;  %s1932_s11 = sshll.u32 %s3315_s1, 4  ;;  %s1933_s11 = int_to_ptr.vmem [resolvable:$true] %s1932_s11 }
 0x7c6   :  { %p3280_p7 = scmp.lt.s32.totalorder %s1933_s11, %s1933_s11 }
 0x7c7   :  { %v1659_v2 = vadd.f32 %v2651_v0, %v1658_v6 }
 0x7c9   :  { %v1660_v22 = vrot.slane %v1659_v2, 4 }
 0x7cb   :  { %v1661_v24 = vadd.f32 %v1660_v22, %v1659_v2  ;;  %v1981_v2 = vld [vmem:[%s3785_s7] ss:$0 sm:$0xff]  ;;  %s3275_s7 = scalar_lea.vmem %s1933_s11, 512 }
 0x7cc   :  { %p3276_p6 = scmp.ne.s32.totalorder %s1933_s11, %s3275_s7  ;;  %p3281_p8 = scmp.lt.s32.totalorder %s3275_s7, %s3275_s7 }
 0x7cd   :  { %v1662_v26 = vrot.slane %v1661_v24, 2 }
 0x7ce   :  { %p3282_p9 = por %p3281_p8, %p3280_p7 }
 0x7cf   :  { %v1663_v27 = vadd.f32 %v1662_v26, %v1661_v24 }
 0x7d0   :  { %p3283_p10 = pnand %p3282_p9, %p3276_p6 }
 0x7df   :  { %v2686_v4 = vpop.f32.mrb[28].mxu0 }
 0x7e0   :  { %v1758_v5 = vpop.f32.mrb[29].mxu0 }
 0x7e1   :  { %v1777_v9 = vadd.f32 %v2686_v4, %v1758_v5 }
 0x7e3   :  { %v2689_v7 = vpop.f32.mrb[30].mxu0 }
 0x7e4   :  { %v1768_v8 = vpop.f32.mrb[31].mxu0 }
 0x7e5   :  { %v1778_v10 = vadd.f32 %v1777_v9, %v1768_v8 }
 0x7e7   :  { %v1779_v13 = vadd.f32 %v2689_v7, %v1778_v10 }
 0x7e9   :  { %v1780_v12 = vrot.slane %v1779_v13, 4 }
 0x7eb   :  { %v1781_v23 = vadd.f32 %v1780_v12, %v1779_v13 }
 0x7ed   :  { %v1782_v25 = vrot.slane %v1781_v23, 2 }
 0x7ef   :  { %v1783_v38 = vadd.f32 %v1782_v25, %v1781_v23 }
 0x7f1   :  { %v1784_v41 = vrot.slane %v1783_v38, 1 }
 0x7f3   :  { %v1785_v14 = vadd.f32 %v1784_v41, %v1783_v38 }
 0x7f5   :  { %v1786_v29 = vmul.f32 0.001953125, %v1785_v14 }
 0x7f7   :  { %v1787_v43 = vsub.f32 %v3586_v30, %v1786_v29  ;;  %v1788_v15 = vsub.f32 %v3583_v28, %v1786_v29  ;;  %v1789_v16 = vsub.f32 %v3590_v33, %v1786_v29  ;;  %v1790_v17 = vsub.f32 %v3588_v32, %v1786_v29 }
 0x7f8   :  { %v1664_v30 = vrot.slane %v1663_v27, 1 }
 0x7f9   :  { %v1791_v18 = vmul.f32 %v1787_v43, %v1787_v43  ;;  %v1792_v19 = vmul.f32 %v1788_v15, %v1788_v15  ;;  %v1793_v20 = vmul.f32 %v1789_v16, %v1789_v16  ;;  %v1794_v21 = vmul.f32 %v1790_v17, %v1790_v17 }
 0x7fa   :  { %v1665_v33 = vadd.f32 %v1664_v30, %v1663_v27 }
 0x7fb   :  { %2722 = vmatprep.mubr.f32.mxu1 %v1791_v18 }
 0x7fc   :  { %2723 = vmatmul.mubr.f32.vlgmr.msra.gmra.mrb[16].mxu1 %v1792_v19  ;;  %v1666_v40 = vmul.f32 0.001953125, %v1665_v33 }
 0x7fd   :  { %2725 = vmatprep.mubr.f32.mxu1 %v1793_v20 }
 0x7fe   :  { %v1668_v45 = vadd.f32 1e-05, %v1666_v40 }
 0x800   :  { %2726 = vmatmul.mubr.f32.gmra.mrb[18].mxu1 %v1794_v21  ;;  %3139 = vrsqrt.f32 %v1668_v45 }
 0x80a   :  { %v3140_v52 = vpop.eup %3139 }
 0x80b   :  { %v1670_v53 = vmul.f32 %v3140_v52, %v1667_v51 }
 0x80d   :  { %v1675_v62 = vrot.slane %v1670_v53, %v3618_v37 }
 0x80f   :  { %v1677_v56 = vmul.f32 %v1675_v62, %v3706_v54  ;;  %v1678_v58 = vmul.f32 %v1675_v62, %v3708_v55  ;;  %v1679_v61 = vmul.f32 %v1675_v62, %v3710_v57  ;;  %v1680_v0 = vmul.f32 %v1675_v62, %v3712_v59 }
 0x811   :  { %v1688_v7 = vadd.f32 %v1980_v3, %v1677_v56  ;;  %v1689_v55 = vadd.f32 %v1980_v3, %v1678_v58  ;;  %v1690_v8 = vadd.f32 %v1980_v3, %v1679_v61  ;;  %v1691_v57 = vadd.f32 %v1980_v3, %v1680_v0 }
 0x8cf   :  { %v2724_v31 = vpop.f32.mrb[16].mxu1 }
 0x8d0   :  { %v1861_v34 = vpop.f32.mrb[17].mxu1 }
 0x8d1   :  { %v1880_v28 = vadd.f32 %v2724_v31, %v1861_v34 }
 0x8d3   :  { %v2727_v35 = vpop.f32.mrb[18].mxu1 }
 0x8d4   :  { %v1871_v36 = vpop.f32.mrb[19].mxu1 }
 0x8d5   :  { %v1881_v32 = vadd.f32 %v1880_v28, %v1871_v36 }
 0x8d7   :  { %v1882_v39 = vadd.f32 %v2727_v35, %v1881_v32 }
 0x8d9   :  { %v1883_v42 = vrot.slane %v1882_v39, 4 }
 0x8db   :  { %v1884_v44 = vadd.f32 %v1883_v42, %v1882_v39 }
 0x8dd   :  { %v1885_v11 = vrot.slane %v1884_v44, 2 }
 0x8df   :  { %v1886_v46 = vadd.f32 %v1885_v11, %v1884_v44 }
 0x8e1   :  { %v1887_v47 = vrot.slane %v1886_v46, 1 }
 0x8e3   :  { %v1888_v48 = vadd.f32 %v1887_v47, %v1886_v46 }
 0x8e5   :  { %v1889_v49 = vmul.f32 0.001953125, %v1888_v48 }
 0x8e7   :  { %v1891_v50 = vadd.f32 1e-05, %v1889_v49 }
 0x8e9   :  { %3141 = vrsqrt.f32 %v1891_v50 }
 0x8f3   :  { %v3142_v63 = vpop.eup %3141 }
 0x8f4   :  { %v1893_v1 = vmul.f32 %v3142_v63, %v1890_v60 }
 0x8f6   :  { %v1898_v6 = vrot.slane %v1893_v1, %v3618_v37 }
 0x8f8   :  { %v1900_v4 = vmul.f32 %v1898_v6, %v1787_v43  ;;  %v1901_v5 = vmul.f32 %v1898_v6, %v1788_v15  ;;  %v1902_v9 = vmul.f32 %v1898_v6, %v1789_v16  ;;  %v1903_v54 = vmul.f32 %v1898_v6, %v1790_v17 }
 0x8fa   :  { %v1911_v10 = vadd.f32 %v1981_v2, %v1900_v4  ;;  %v1912_v59 = vadd.f32 %v1981_v2, %v1901_v5  ;;  %v1913_v13 = vadd.f32 %v1981_v2, %v1902_v9  ;;  %v1914_v12 = vadd.f32 %v1981_v2, %v1903_v54 }
 0x8fc   :  { %v1915_v23 = vadd.f32 %v1911_v10, %v1688_v7  ;;  %v1916_v37 = vadd.f32 %v1912_v59, %v1689_v55  ;;  %v1917_v25 = vadd.f32 %v1913_v13, %v1690_v8  ;;  %v1918_v38 = vadd.f32 %v1914_v12, %v1691_v57 }
 0x8fe   :  { %v1919_v41 = vmax.f32 %v1915_v23, 0.0  ;;  %v1920_v14 = vmax.f32 %v1916_v37, 0.0  ;;  %v1921_v29 = vmax.f32 %v1917_v25, 0.0  ;;  %v1922_v43 = vmax.f32 %v1918_v38, 0.0 }
 0x900   :  { %1923 = vst [vmem:[#allocation13] sm:$0xff] %v1919_v41  ;;  %1924 = vst [vmem:[#allocation13 + $0x8] sm:$0xff] %v1920_v14 }
 0x901   :  { %1925 = vst [vmem:[#allocation13 + $0x10] sm:$0xff] %v1921_v29  ;;  %1926 = vst [vmem:[#allocation13 + $0x18] sm:$0xff] %v1922_v43 }
 0x902   :  { %3286 = shalt.err (!%p3283_p10)
}
 0x903   :  { %s3287_s22 = scalar_lea.hbm %s3790_s12, 512 }
 0x904   :  { %p3288_p11 = scmp.ne.s32.totalorder %s3790_s12, %s3287_s22  ;;  %p3291_p12 = scmp.lt.u32.totalorder %s3287_s22, %s3790_s12 }
 0x906   :  { %p3293_p13 = pnand %p3291_p12, %p3288_p11 }
 0x908   :  { %3296 = shalt.err (!%p3293_p13)
}
 0x909   :  { %1938 = dma.vmem_to_hbm [thread:$0]  %s1933_s11, 512, %s3790_s12, [#allocation4], %s3309_s15, %s3309_s15, %s3310_s16  }
 0x90a   :  { %3305 = dma.done.wait [#allocation4], 512  }
 0x90b   :  { %3306 = vsyncadd [#allocation4], 4294966784 }
 0x90c   :  { %1942 = vsyncpa [#allocation3], 1 }
 0x90d   :  { %1943 = vsyncpa [#allocation6], 1 }
 0x90e   :  { %1944 = vsyncpa [#allocation9], 1 }
 0x90f   :  { %1945 = vsyncpa [#allocation12], 1 }
 0x910   :  { %1946 = vsyncpa [#allocation4], 1 }

</bundles_post_ra>
